<compile_context>
chip_gen: v7x
topology: tpu7x:2x2x1
jax: 0.10.0
libtpu: 0.0.40
codegen_flags: <defaults>
</compile_context>

<pallas_src>
import functools

import jax
import jax.numpy as jnp
from jax.experimental import pallas as pl
from jax.experimental.pallas import tpu as pltpu

# Small synthetic sizes consistent with the module's forward pass.
VOCAB = 20          # len(word_to_index)
EMB = 16            # emb_dim
HIDDEN = 32         # lstm_size
SEQ = 8             # sequence length
BATCH = 2
NUM_CLASSES = 2
GATES = 4 * HIDDEN  # 128 -> exactly one lane dimension

# Packed-slab row offsets (all multiples of 8 for clean sublane alignment).
_R_WIH0 = 0                        # (128, 128) layer-0 input weights (rows >= EMB zero)
_R_WHH0 = _R_WIH0 + GATES          # 128: (H, 128) layer-0 hidden weights
_R_W1H0 = _R_WHH0 + HIDDEN         # 160: (H, 128) layer-1 weights applied to h0_t
_R_W1H1 = _R_W1H0 + HIDDEN         # 192: (H, 128) layer-1 weights applied to h1_{t-1}
_R_B0 = _R_W1H1 + HIDDEN           # 224: (1, 128) layer-0 bias (b_ih + b_hh), 8-row pad
_R_B1 = _R_B0 + 8                  # 232: (1, 128) layer-1 bias, 8-row pad
_R_WOUT = _R_B1 + 8                # 240: (H, 128) output head, cols 0:2 valid
_R_BOUT = _R_WOUT + HIDDEN         # 272: (1, 128) output bias, cols >= 2 are -1e30
_R_X = _R_BOUT + 8                 # 280: (T*B_pad, 128) embedded inputs (cols >= EMB zero)


def _lstm_kernel(s_ref, out_ref, *, seq_len, batch):
    """s_ref: (280 + T*batch, 128) f32 slab (weights + lane-padded embedded inputs);
    out_ref: (batch, 128) softmax over 128 lanes (only cols 0:NUM_CLASSES meaningful)."""
    H = HIDDEN
    TB = seq_len * batch

    # ---- prologue: hoist loop-invariant loads; bf16 only for MXU operands ----
    w_ih0 = s_ref[_R_WIH0:_R_WIH0 + GATES, :].astype(jnp.bfloat16)   # (128, 4H)
    w_hh0 = s_ref[_R_WHH0:_R_WHH0 + H, :].astype(jnp.bfloat16)       # (H, 4H)
    w1_h0 = s_ref[_R_W1H0:_R_W1H0 + H, :].astype(jnp.bfloat16)       # (H, 4H)
    w1_h1 = s_ref[_R_W1H1:_R_W1H1 + H, :].astype(jnp.bfloat16)       # (H, 4H)
    b0 = s_ref[_R_B0:_R_B0 + 1, :]                                   # (1, 4H) f32
    b1 = jnp.broadcast_to(s_ref[_R_B1:_R_B1 + 1, :], (batch, GATES)) # hoisted bcast
    x = s_ref[_R_X:_R_X + TB, :].astype(jnp.bfloat16)                # (T*B, 128)

    # Layer-0 input projection for ALL timesteps in one MXU pass (+ b0 folded once):
    # (T*B, 128) @ (128, 4H) -> (T*B, 4H) f32 accumulation.
    xz0 = jnp.dot(x, w_ih0, preferred_element_type=jnp.float32) + b0

    def gates(z):
        # One lane-dense (B, 4H) sigmoid for i|f|g|o.  g-gate columns were pre-scaled
        # by 2 at pack time, so tanh(z_g) = 2*sigmoid(2*z_g) - 1 (cheap VPU FMA).
        s = jax.nn.sigmoid(z)
        return (s[:, 0 * H:1 * H], s[:, 1 * H:2 * H],
                2.0 * s[:, 2 * H:3 * H] - 1.0, s[:, 3 * H:4 * H])

    zeros = jnp.zeros((batch, H), jnp.float32)
    h0, c0, h1, c1 = zeros, zeros, zeros, zeros
    h0b = jnp.zeros((batch, H), jnp.bfloat16)   # bf16 copies of h (MXU operands)
    h1b = jnp.zeros((batch, H), jnp.bfloat16)

    # TODO(synk): nn.LSTM(dropout=0.5) applies dropout between layers only in
    # training mode; eval-mode (inference) semantics are implemented here.
    for t in range(seq_len):  # T=8: fully unrolled (static trip count)
        # Layer-1 partial that only needs h1_{t-1}: independent of this step's layer 0,
        # so the scheduler can overlap it with the layer-0 matmul/gates.
        z1_h = jnp.dot(h1b, w1_h1, preferred_element_type=jnp.float32) + b1

        # ---- layer 0: one (B, H) @ (H, 4H) matmul per step (input proj hoisted)
        z0 = xz0[t * batch:(t + 1) * batch, :] + jnp.dot(
            h0b, w_hh0, preferred_element_type=jnp.float32)
        i0, f0, g0, o0 = gates(z0)
        c0 = f0 * c0 + i0 * g0
        h0 = o0 * jnp.tanh(c0)
        h0b = h0.astype(jnp.bfloat16)

        # ---- layer 1: split matmul, no concatenate
        z1 = z1_h + jnp.dot(h0b, w1_h0, preferred_element_type=jnp.float32)
        i1, f1, g1, o1 = gates(z1)
        c1 = f1 * c1 + i1 * g1
        h1 = o1 * jnp.tanh(c1)
        h1b = h1.astype(jnp.bfloat16)

    # ---- epilogue: head weights loaded only now (kept out of loop live range) ----
    w_out = s_ref[_R_WOUT:_R_WOUT + H, :].astype(jnp.bfloat16)   # (H, 128), cols>=2 zero
    b_out = s_ref[_R_BOUT:_R_BOUT + 1, :]                        # (1, 128), cols>=2 = -1e30

    # x = x[:, -1, :] -> last-timestep hidden of top layer; Linear + softmax over the
    # full 128 lanes (padded lanes carry -1e30 -> exp underflows to exactly 0).
    logits = jnp.dot(h1b, w_out, preferred_element_type=jnp.float32) + b_out
    m = jnp.max(logits, axis=-1, keepdims=True)
    e = jnp.exp(logits - m)
    denom = jnp.sum(e, axis=-1, keepdims=True)
    out_ref[...] = e * pl.reciprocal(denom, approx=True)


def init_params(key):
    ks = jax.random.split(key, 11)
    bound = 1.0 / jnp.sqrt(jnp.float32(HIDDEN))

    def u(k, shape):
        return jax.random.uniform(k, shape, jnp.float32, -bound, bound)

    return dict(
        # Synthetic "pretrained" embedding table (stands in for the GloVe matrix).
        embedding=jax.random.normal(ks[0], (VOCAB, EMB), jnp.float32),
        # layer 0: input E -> hidden H ; gate order (i, f, g, o), stored (4, in, H)
        w_ih0=u(ks[1], (4, EMB, HIDDEN)),
        w_hh0=u(ks[2], (4, HIDDEN, HIDDEN)),
        b0=u(ks[3], (4, HIDDEN)) + u(ks[4], (4, HIDDEN)),   # b_ih + b_hh pre-summed
        # layer 1: input H -> hidden H
        w_ih1=u(ks[5], (4, HIDDEN, HIDDEN)),
        w_hh1=u(ks[6], (4, HIDDEN, HIDDEN)),
        b1=u(ks[7], (4, HIDDEN)) + u(ks[8], (4, HIDDEN)),
        # output head: Linear(H, 2) stored transposed as (H, 2)
        w_out=u(ks[9], (HIDDEN, NUM_CLASSES)),
        b_out=u(ks[10], (NUM_CLASSES,)),
    )


def pack_weights(p):
    """Pack all LSTM + head parameters into one (280, 128) f32 block.

    Per-gate (4, in, H) stacks are fused into (in, 4H) so each per-step matmul fills
    a full 128-lane vreg (gate order i|f|g|o, PyTorch order).  The g-gate columns of
    every gate weight/bias are pre-scaled by 2 to enable the single-sigmoid gate
    nonlinearity (tanh(x) = 2*sigmoid(2x) - 1).
    NOTE: this layout is self-consistent with init_params; importing real PyTorch
    checkpoints would require transposing its (4H, in) row-stacked weights.
    """
    H = HIDDEN
    gscale = jnp.concatenate([
        jnp.ones((H,), jnp.float32), jnp.ones((H,), jnp.float32),
        jnp.full((H,), 2.0, jnp.float32), jnp.ones((H,), jnp.float32)])

    def fuse(w):  # (4, in, H) -> (in, 4H), g-gate columns pre-scaled by 2
        return jnp.concatenate([w[k] for k in range(4)], axis=-1) * gscale

    def pad_rows(a, rows):
        return jnp.pad(a, ((0, rows - a.shape[0]), (0, 0)))

    w_ih0 = pad_rows(fuse(p["w_ih0"]), GATES)                 # rows   0:128 (rows>=EMB zero)
    w_hh0 = fuse(p["w_hh0"])                                  # rows 128:160
    w1_h0 = fuse(p["w_ih1"])                                  # rows 160:192
    w1_h1 = fuse(p["w_hh1"])                                  # rows 192:224
    b0 = pad_rows(p["b0"].reshape(1, GATES) * gscale, 8)      # rows 224:232
    b1 = pad_rows(p["b1"].reshape(1, GATES) * gscale, 8)      # rows 232:240
    w_out = jnp.pad(p["w_out"], ((0, 0), (0, GATES - NUM_CLASSES)))   # rows 240:272
    b_out = jnp.full((1, GATES), -1e30, jnp.float32)
    b_out = b_out.at[0, :NUM_CLASSES].set(p["b_out"])
    b_out = pad_rows(b_out, 8)                                # rows 272:280

    slab = jnp.concatenate(
        [w_ih0, w_hh0, w1_h0, w1_h1, b0, b1, w_out, b_out], axis=0).astype(jnp.float32)
    assert slab.shape == (_R_X, GATES)
    return slab


def lstm_model_forward(data, params):
    B, T = data.shape
    # Embedding lookup on the frozen table (plain-JAX glue), time-major, padded to
    # 8 sublanes x 128 lanes, and appended to the weight slab -> ONE lane-dense DMA.
    # TODO(synk): the gather itself stays in XLA; folding it into the kernel via
    # scalar prefetch is possible but not worthwhile at these sizes.
    x = jnp.take(params["embedding"], data.astype(jnp.int32), axis=0)   # (B, T, E)
    b_pad = ((B + 7) // 8) * 8          # fill all 8 sublanes of every vreg
    x = jnp.pad(x, ((0, b_pad - B), (0, 0), (0, 0)))
    x = jnp.transpose(x, (1, 0, 2)).reshape(T * b_pad, EMB)
    x = jnp.pad(x, ((0, 0), (0, GATES - EMB))).astype(jnp.float32)      # (T*b_pad, 128)

    slab = jnp.concatenate([pack_weights(params), x], axis=0)           # (280+T*b_pad, 128)

    vmem = pl.BlockSpec(memory_space=pltpu.MemorySpace.VMEM)
    out = pl.pallas_call(
        functools.partial(_lstm_kernel, seq_len=T, batch=b_pad),
        out_shape=jax.ShapeDtypeStruct((b_pad, GATES), jnp.float32),    # lane-dense store
        in_specs=[vmem],
        out_specs=vmem,
    )(slab)
    return out[:B, :NUM_CLASSES]


def lstm_model_forward_ref(data, params):
    """Pure-JAX f32 reference (standard LSTM equations) for correctness checking."""
    H = HIDDEN
    x = jnp.take(params["embedding"], data.astype(jnp.int32), axis=0)   # (B, T, E)
    B, T, _ = x.shape

    def fuse(w):
        return jnp.concatenate([w[k] for k in range(4)], axis=-1)

    def cell(h, c, z):
        i = jax.nn.sigmoid(z[:, 0 * H:1 * H])
        f = jax.nn.sigmoid(z[:, 1 * H:2 * H])
        g = jnp.tanh(z[:, 2 * H:3 * H])
        o = jax.nn.sigmoid(z[:, 3 * H:4 * H])
        c = f * c + i * g
        return o * jnp.tanh(c), c

    wi0, wh0 = fuse(params["w_ih0"]), fuse(params["w_hh0"])
    wi1, wh1 = fuse(params["w_ih1"]), fuse(params["w_hh1"])
    b0 = params["b0"].reshape(-1)
    b1 = params["b1"].reshape(-1)
    h0 = c0 = h1 = c1 = jnp.zeros((B, H), jnp.float32)
    for t in range(T):
        h0, c0 = cell(h0, c0, x[:, t] @ wi0 + h0 @ wh0 + b0)
        h1, c1 = cell(h1, c1, h0 @ wi1 + h1 @ wh1 + b1)
    logits = h1 @ params["w_out"] + params["b_out"]
    return jax.nn.softmax(logits, axis=-1)


if __name__ == "__main__":
    key = jax.random.PRNGKey(0)
    pkey, dkey = jax.random.split(key)
    params = init_params(pkey)
    data = jax.random.randint(dkey, (BATCH, SEQ), 0, VOCAB, dtype=jnp.int32)

    out = jax.block_until_ready(lstm_model_forward(data, params))
    ref = lstm_model_forward_ref(data, params)

    assert out.shape == (BATCH, NUM_CLASSES)
    assert bool(jnp.all(jnp.isfinite(out)))
    # Rows of a softmax sum to ~1 (approx-reciprocal + bf16 MXU operands => loose tol).
    assert bool(jnp.allclose(out.sum(axis=-1), 1.0, atol=1e-2))
    assert bool(jnp.allclose(out, ref, atol=5e-2))
    print("KERNEL_OK")
</pallas_src>

<mosaic_0001>
module attributes {stable_mosaic.version = 11 : i64} {
  func.func @_lstm_kernel(%arg0: memref<344x128xf32, #tpu.memory_space<vmem>>, %arg1: memref<8x128xf32, #tpu.memory_space<vmem>>) attributes {dimension_semantics = [], scalar_prefetch = 0 : i64, scratch_operands = 0 : i64, tpu.core_type = #tpu.core_type<tc>} {
    %c0 = arith.constant 0 : index
    %c0_0 = arith.constant 0 : index
    %0 = vector.load %arg0[%c0, %c0_0] : memref<344x128xf32, #tpu.memory_space<vmem>>, vector<128x128xf32>
    %1 = arith.truncf %0 : vector<128x128xf32> to vector<128x128xbf16>
    %c128 = arith.constant 128 : index
    %c0_1 = arith.constant 0 : index
    %2 = vector.load %arg0[%c128, %c0_1] : memref<344x128xf32, #tpu.memory_space<vmem>>, vector<32x128xf32>
    %3 = arith.truncf %2 : vector<32x128xf32> to vector<32x128xbf16>
    %c160 = arith.constant 160 : index
    %c0_2 = arith.constant 0 : index
    %4 = vector.load %arg0[%c160, %c0_2] : memref<344x128xf32, #tpu.memory_space<vmem>>, vector<32x128xf32>
    %5 = arith.truncf %4 : vector<32x128xf32> to vector<32x128xbf16>
    %c192 = arith.constant 192 : index
    %c0_3 = arith.constant 0 : index
    %6 = vector.load %arg0[%c192, %c0_3] : memref<344x128xf32, #tpu.memory_space<vmem>>, vector<32x128xf32>
    %7 = arith.truncf %6 : vector<32x128xf32> to vector<32x128xbf16>
    %c224 = arith.constant 224 : index
    %c0_4 = arith.constant 0 : index
    %8 = vector.load %arg0[%c224, %c0_4] : memref<344x128xf32, #tpu.memory_space<vmem>>, vector<1x128xf32>
    %c232 = arith.constant 232 : index
    %c0_5 = arith.constant 0 : index
    %9 = vector.load %arg0[%c232, %c0_5] : memref<344x128xf32, #tpu.memory_space<vmem>>, vector<1x128xf32>
    %10 = vector.shape_cast %9 : vector<1x128xf32> to vector<1x128xf32>
    %11 = vector.broadcast %10 : vector<1x128xf32> to vector<8x128xf32>
    %c280 = arith.constant 280 : index
    %c0_6 = arith.constant 0 : index
    %12 = vector.load %arg0[%c280, %c0_6] : memref<344x128xf32, #tpu.memory_space<vmem>>, vector<64x128xf32>
    %13 = arith.truncf %12 : vector<64x128xf32> to vector<64x128xbf16>
    %cst = arith.constant dense<0.000000e+00> : vector<64x128xf32>
    %14 = tpu.matmul %13, %1, %cst {dimension_numbers = #tpu.dot_dimension_numbers<[1], [0], [0], [1], [0, 0, 1, 1], [], []>} : vector<64x128xbf16>, vector<128x128xbf16>, vector<64x128xf32> -> vector<64x128xf32>
    %15 = vector.broadcast %8 : vector<1x128xf32> to vector<64x128xf32>
    %16 = arith.addf %14, %15 : vector<64x128xf32>
    %cst_7 = arith.constant 0.000000e+00 : f32
    %17 = vector.broadcast %cst_7 : f32 to vector<8x32xf32>
    %cst_8 = arith.constant 0.000000e+00 : bf16
    %18 = vector.broadcast %cst_8 : bf16 to vector<8x32xbf16>
    %cst_9 = arith.constant 0.000000e+00 : bf16
    %19 = vector.broadcast %cst_9 : bf16 to vector<8x32xbf16>
    %cst_10 = arith.constant dense<0.000000e+00> : vector<8x128xf32>
    %20 = tpu.matmul %19, %7, %cst_10 {dimension_numbers = #tpu.dot_dimension_numbers<[1], [0], [0], [1], [0, 0, 1, 1], [], []>} : vector<8x32xbf16>, vector<32x128xbf16>, vector<8x128xf32> -> vector<8x128xf32>
    %21 = arith.addf %20, %11 : vector<8x128xf32>
    %22 = vector.extract_strided_slice %16 {offsets = [0, 0], sizes = [8, 128], strides = [1, 1]} : vector<64x128xf32> to vector<8x128xf32>
    %cst_11 = arith.constant dense<0.000000e+00> : vector<8x128xf32>
    %23 = tpu.matmul %18, %3, %cst_11 {dimension_numbers = #tpu.dot_dimension_numbers<[1], [0], [0], [1], [0, 0, 1, 1], [], []>} : vector<8x32xbf16>, vector<32x128xbf16>, vector<8x128xf32> -> vector<8x128xf32>
    %24 = arith.addf %22, %23 : vector<8x128xf32>
    %25 = arith.negf %24 : vector<8x128xf32>
    %26 = math.exp %25 : vector<8x128xf32>
    %cst_12 = arith.constant 1.000000e+00 : f32
    %27 = vector.broadcast %cst_12 : f32 to vector<8x128xf32>
    %28 = arith.addf %27, %26 : vector<8x128xf32>
    %29 = arith.divf %27, %28 : vector<8x128xf32>
    %30 = vector.extract_strided_slice %29 {offsets = [0, 0], sizes = [8, 32], strides = [1, 1]} : vector<8x128xf32> to vector<8x32xf32>
    %31 = vector.extract_strided_slice %29 {offsets = [0, 32], sizes = [8, 32], strides = [1, 1]} : vector<8x128xf32> to vector<8x32xf32>
    %32 = vector.extract_strided_slice %29 {offsets = [0, 64], sizes = [8, 32], strides = [1, 1]} : vector<8x128xf32> to vector<8x32xf32>
    %cst_13 = arith.constant 2.000000e+00 : f32
    %33 = vector.broadcast %cst_13 : f32 to vector<8x32xf32>
    %34 = arith.mulf %33, %32 : vector<8x32xf32>
    %cst_14 = arith.constant 1.000000e+00 : f32
    %35 = vector.broadcast %cst_14 : f32 to vector<8x32xf32>
    %36 = arith.subf %34, %35 : vector<8x32xf32>
    %37 = vector.extract_strided_slice %29 {offsets = [0, 96], sizes = [8, 32], strides = [1, 1]} : vector<8x128xf32> to vector<8x32xf32>
    %38 = arith.mulf %31, %17 : vector<8x32xf32>
    %39 = arith.mulf %30, %36 : vector<8x32xf32>
    %40 = arith.addf %38, %39 : vector<8x32xf32>
    %41 = math.tanh %40 : vector<8x32xf32>
    %42 = arith.mulf %37, %41 : vector<8x32xf32>
    %43 = arith.truncf %42 : vector<8x32xf32> to vector<8x32xbf16>
    %cst_15 = arith.constant dense<0.000000e+00> : vector<8x128xf32>
    %44 = tpu.matmul %43, %5, %cst_15 {dimension_numbers = #tpu.dot_dimension_numbers<[1], [0], [0], [1], [0, 0, 1, 1], [], []>} : vector<8x32xbf16>, vector<32x128xbf16>, vector<8x128xf32> -> vector<8x128xf32>
    %45 = arith.addf %21, %44 : vector<8x128xf32>
    %46 = arith.negf %45 : vector<8x128xf32>
    %47 = math.exp %46 : vector<8x128xf32>
    %cst_16 = arith.constant 1.000000e+00 : f32
    %48 = vector.broadcast %cst_16 : f32 to vector<8x128xf32>
    %49 = arith.addf %48, %47 : vector<8x128xf32>
    %50 = arith.divf %48, %49 : vector<8x128xf32>
    %51 = vector.extract_strided_slice %50 {offsets = [0, 0], sizes = [8, 32], strides = [1, 1]} : vector<8x128xf32> to vector<8x32xf32>
    %52 = vector.extract_strided_slice %50 {offsets = [0, 32], sizes = [8, 32], strides = [1, 1]} : vector<8x128xf32> to vector<8x32xf32>
    %53 = vector.extract_strided_slice %50 {offsets = [0, 64], sizes = [8, 32], strides = [1, 1]} : vector<8x128xf32> to vector<8x32xf32>
    %cst_17 = arith.constant 2.000000e+00 : f32
    %54 = vector.broadcast %cst_17 : f32 to vector<8x32xf32>
    %55 = arith.mulf %54, %53 : vector<8x32xf32>
    %cst_18 = arith.constant 1.000000e+00 : f32
    %56 = vector.broadcast %cst_18 : f32 to vector<8x32xf32>
    %57 = arith.subf %55, %56 : vector<8x32xf32>
    %58 = vector.extract_strided_slice %50 {offsets = [0, 96], sizes = [8, 32], strides = [1, 1]} : vector<8x128xf32> to vector<8x32xf32>
    %59 = arith.mulf %52, %17 : vector<8x32xf32>
    %60 = arith.mulf %51, %57 : vector<8x32xf32>
    %61 = arith.addf %59, %60 : vector<8x32xf32>
    %62 = math.tanh %61 : vector<8x32xf32>
    %63 = arith.mulf %58, %62 : vector<8x32xf32>
    %64 = arith.truncf %63 : vector<8x32xf32> to vector<8x32xbf16>
    %cst_19 = arith.constant dense<0.000000e+00> : vector<8x128xf32>
    %65 = tpu.matmul %64, %7, %cst_19 {dimension_numbers = #tpu.dot_dimension_numbers<[1], [0], [0], [1], [0, 0, 1, 1], [], []>} : vector<8x32xbf16>, vector<32x128xbf16>, vector<8x128xf32> -> vector<8x128xf32>
    %66 = arith.addf %65, %11 : vector<8x128xf32>
    %67 = vector.extract_strided_slice %16 {offsets = [8, 0], sizes = [8, 128], strides = [1, 1]} : vector<64x128xf32> to vector<8x128xf32>
    %cst_20 = arith.constant dense<0.000000e+00> : vector<8x128xf32>
    %68 = tpu.matmul %43, %3, %cst_20 {dimension_numbers = #tpu.dot_dimension_numbers<[1], [0], [0], [1], [0, 0, 1, 1], [], []>} : vector<8x32xbf16>, vector<32x128xbf16>, vector<8x128xf32> -> vector<8x128xf32>
    %69 = arith.addf %67, %68 : vector<8x128xf32>
    %70 = arith.negf %69 : vector<8x128xf32>
    %71 = math.exp %70 : vector<8x128xf32>
    %cst_21 = arith.constant 1.000000e+00 : f32
    %72 = vector.broadcast %cst_21 : f32 to vector<8x128xf32>
    %73 = arith.addf %72, %71 : vector<8x128xf32>
    %74 = arith.divf %72, %73 : vector<8x128xf32>
    %75 = vector.extract_strided_slice %74 {offsets = [0, 0], sizes = [8, 32], strides = [1, 1]} : vector<8x128xf32> to vector<8x32xf32>
    %76 = vector.extract_strided_slice %74 {offsets = [0, 32], sizes = [8, 32], strides = [1, 1]} : vector<8x128xf32> to vector<8x32xf32>
    %77 = vector.extract_strided_slice %74 {offsets = [0, 64], sizes = [8, 32], strides = [1, 1]} : vector<8x128xf32> to vector<8x32xf32>
    %cst_22 = arith.constant 2.000000e+00 : f32
    %78 = vector.broadcast %cst_22 : f32 to vector<8x32xf32>
    %79 = arith.mulf %78, %77 : vector<8x32xf32>
    %cst_23 = arith.constant 1.000000e+00 : f32
    %80 = vector.broadcast %cst_23 : f32 to vector<8x32xf32>
    %81 = arith.subf %79, %80 : vector<8x32xf32>
    %82 = vector.extract_strided_slice %74 {offsets = [0, 96], sizes = [8, 32], strides = [1, 1]} : vector<8x128xf32> to vector<8x32xf32>
    %83 = arith.mulf %76, %40 : vector<8x32xf32>
    %84 = arith.mulf %75, %81 : vector<8x32xf32>
    %85 = arith.addf %83, %84 : vector<8x32xf32>
    %86 = math.tanh %85 : vector<8x32xf32>
    %87 = arith.mulf %82, %86 : vector<8x32xf32>
    %88 = arith.truncf %87 : vector<8x32xf32> to vector<8x32xbf16>
    %cst_24 = arith.constant dense<0.000000e+00> : vector<8x128xf32>
    %89 = tpu.matmul %88, %5, %cst_24 {dimension_numbers = #tpu.dot_dimension_numbers<[1], [0], [0], [1], [0, 0, 1, 1], [], []>} : vector<8x32xbf16>, vector<32x128xbf16>, vector<8x128xf32> -> vector<8x128xf32>
    %90 = arith.addf %66, %89 : vector<8x128xf32>
    %91 = arith.negf %90 : vector<8x128xf32>
    %92 = math.exp %91 : vector<8x128xf32>
    %cst_25 = arith.constant 1.000000e+00 : f32
    %93 = vector.broadcast %cst_25 : f32 to vector<8x128xf32>
    %94 = arith.addf %93, %92 : vector<8x128xf32>
    %95 = arith.divf %93, %94 : vector<8x128xf32>
    %96 = vector.extract_strided_slice %95 {offsets = [0, 0], sizes = [8, 32], strides = [1, 1]} : vector<8x128xf32> to vector<8x32xf32>
    %97 = vector.extract_strided_slice %95 {offsets = [0, 32], sizes = [8, 32], strides = [1, 1]} : vector<8x128xf32> to vector<8x32xf32>
    %98 = vector.extract_strided_slice %95 {offsets = [0, 64], sizes = [8, 32], strides = [1, 1]} : vector<8x128xf32> to vector<8x32xf32>
    %cst_26 = arith.constant 2.000000e+00 : f32
    %99 = vector.broadcast %cst_26 : f32 to vector<8x32xf32>
    %100 = arith.mulf %99, %98 : vector<8x32xf32>
    %cst_27 = arith.constant 1.000000e+00 : f32
    %101 = vector.broadcast %cst_27 : f32 to vector<8x32xf32>
    %102 = arith.subf %100, %101 : vector<8x32xf32>
    %103 = vector.extract_strided_slice %95 {offsets = [0, 96], sizes = [8, 32], strides = [1, 1]} : vector<8x128xf32> to vector<8x32xf32>
    %104 = arith.mulf %97, %61 : vector<8x32xf32>
    %105 = arith.mulf %96, %102 : vector<8x32xf32>
    %106 = arith.addf %104, %105 : vector<8x32xf32>
    %107 = math.tanh %106 : vector<8x32xf32>
    %108 = arith.mulf %103, %107 : vector<8x32xf32>
    %109 = arith.truncf %108 : vector<8x32xf32> to vector<8x32xbf16>
    %cst_28 = arith.constant dense<0.000000e+00> : vector<8x128xf32>
    %110 = tpu.matmul %109, %7, %cst_28 {dimension_numbers = #tpu.dot_dimension_numbers<[1], [0], [0], [1], [0, 0, 1, 1], [], []>} : vector<8x32xbf16>, vector<32x128xbf16>, vector<8x128xf32> -> vector<8x128xf32>
    %111 = arith.addf %110, %11 : vector<8x128xf32>
    %112 = vector.extract_strided_slice %16 {offsets = [16, 0], sizes = [8, 128], strides = [1, 1]} : vector<64x128xf32> to vector<8x128xf32>
    %cst_29 = arith.constant dense<0.000000e+00> : vector<8x128xf32>
    %113 = tpu.matmul %88, %3, %cst_29 {dimension_numbers = #tpu.dot_dimension_numbers<[1], [0], [0], [1], [0, 0, 1, 1], [], []>} : vector<8x32xbf16>, vector<32x128xbf16>, vector<8x128xf32> -> vector<8x128xf32>
    %114 = arith.addf %112, %113 : vector<8x128xf32>
    %115 = arith.negf %114 : vector<8x128xf32>
    %116 = math.exp %115 : vector<8x128xf32>
    %cst_30 = arith.constant 1.000000e+00 : f32
    %117 = vector.broadcast %cst_30 : f32 to vector<8x128xf32>
    %118 = arith.addf %117, %116 : vector<8x128xf32>
    %119 = arith.divf %117, %118 : vector<8x128xf32>
    %120 = vector.extract_strided_slice %119 {offsets = [0, 0], sizes = [8, 32], strides = [1, 1]} : vector<8x128xf32> to vector<8x32xf32>
    %121 = vector.extract_strided_slice %119 {offsets = [0, 32], sizes = [8, 32], strides = [1, 1]} : vector<8x128xf32> to vector<8x32xf32>
    %122 = vector.extract_strided_slice %119 {offsets = [0, 64], sizes = [8, 32], strides = [1, 1]} : vector<8x128xf32> to vector<8x32xf32>
    %cst_31 = arith.constant 2.000000e+00 : f32
    %123 = vector.broadcast %cst_31 : f32 to vector<8x32xf32>
    %124 = arith.mulf %123, %122 : vector<8x32xf32>
    %cst_32 = arith.constant 1.000000e+00 : f32
    %125 = vector.broadcast %cst_32 : f32 to vector<8x32xf32>
    %126 = arith.subf %124, %125 : vector<8x32xf32>
    %127 = vector.extract_strided_slice %119 {offsets = [0, 96], sizes = [8, 32], strides = [1, 1]} : vector<8x128xf32> to vector<8x32xf32>
    %128 = arith.mulf %121, %85 : vector<8x32xf32>
    %129 = arith.mulf %120, %126 : vector<8x32xf32>
    %130 = arith.addf %128, %129 : vector<8x32xf32>
    %131 = math.tanh %130 : vector<8x32xf32>
    %132 = arith.mulf %127, %131 : vector<8x32xf32>
    %133 = arith.truncf %132 : vector<8x32xf32> to vector<8x32xbf16>
    %cst_33 = arith.constant dense<0.000000e+00> : vector<8x128xf32>
    %134 = tpu.matmul %133, %5, %cst_33 {dimension_numbers = #tpu.dot_dimension_numbers<[1], [0], [0], [1], [0, 0, 1, 1], [], []>} : vector<8x32xbf16>, vector<32x128xbf16>, vector<8x128xf32> -> vector<8x128xf32>
    %135 = arith.addf %111, %134 : vector<8x128xf32>
    %136 = arith.negf %135 : vector<8x128xf32>
    %137 = math.exp %136 : vector<8x128xf32>
    %cst_34 = arith.constant 1.000000e+00 : f32
    %138 = vector.broadcast %cst_34 : f32 to vector<8x128xf32>
    %139 = arith.addf %138, %137 : vector<8x128xf32>
    %140 = arith.divf %138, %139 : vector<8x128xf32>
    %141 = vector.extract_strided_slice %140 {offsets = [0, 0], sizes = [8, 32], strides = [1, 1]} : vector<8x128xf32> to vector<8x32xf32>
    %142 = vector.extract_strided_slice %140 {offsets = [0, 32], sizes = [8, 32], strides = [1, 1]} : vector<8x128xf32> to vector<8x32xf32>
    %143 = vector.extract_strided_slice %140 {offsets = [0, 64], sizes = [8, 32], strides = [1, 1]} : vector<8x128xf32> to vector<8x32xf32>
    %cst_35 = arith.constant 2.000000e+00 : f32
    %144 = vector.broadcast %cst_35 : f32 to vector<8x32xf32>
    %145 = arith.mulf %144, %143 : vector<8x32xf32>
    %cst_36 = arith.constant 1.000000e+00 : f32
    %146 = vector.broadcast %cst_36 : f32 to vector<8x32xf32>
    %147 = arith.subf %145, %146 : vector<8x32xf32>
    %148 = vector.extract_strided_slice %140 {offsets = [0, 96], sizes = [8, 32], strides = [1, 1]} : vector<8x128xf32> to vector<8x32xf32>
    %149 = arith.mulf %142, %106 : vector<8x32xf32>
    %150 = arith.mulf %141, %147 : vector<8x32xf32>
    %151 = arith.addf %149, %150 : vector<8x32xf32>
    %152 = math.tanh %151 : vector<8x32xf32>
    %153 = arith.mulf %148, %152 : vector<8x32xf32>
    %154 = arith.truncf %153 : vector<8x32xf32> to vector<8x32xbf16>
    %cst_37 = arith.constant dense<0.000000e+00> : vector<8x128xf32>
    %155 = tpu.matmul %154, %7, %cst_37 {dimension_numbers = #tpu.dot_dimension_numbers<[1], [0], [0], [1], [0, 0, 1, 1], [], []>} : vector<8x32xbf16>, vector<32x128xbf16>, vector<8x128xf32> -> vector<8x128xf32>
    %156 = arith.addf %155, %11 : vector<8x128xf32>
    %157 = vector.extract_strided_slice %16 {offsets = [24, 0], sizes = [8, 128], strides = [1, 1]} : vector<64x128xf32> to vector<8x128xf32>
    %cst_38 = arith.constant dense<0.000000e+00> : vector<8x128xf32>
    %158 = tpu.matmul %133, %3, %cst_38 {dimension_numbers = #tpu.dot_dimension_numbers<[1], [0], [0], [1], [0, 0, 1, 1], [], []>} : vector<8x32xbf16>, vector<32x128xbf16>, vector<8x128xf32> -> vector<8x128xf32>
    %159 = arith.addf %157, %158 : vector<8x128xf32>
    %160 = arith.negf %159 : vector<8x128xf32>
    %161 = math.exp %160 : vector<8x128xf32>
    %cst_39 = arith.constant 1.000000e+00 : f32
    %162 = vector.broadcast %cst_39 : f32 to vector<8x128xf32>
    %163 = arith.addf %162, %161 : vector<8x128xf32>
    %164 = arith.divf %162, %163 : vector<8x128xf32>
    %165 = vector.extract_strided_slice %164 {offsets = [0, 0], sizes = [8, 32], strides = [1, 1]} : vector<8x128xf32> to vector<8x32xf32>
    %166 = vector.extract_strided_slice %164 {offsets = [0, 32], sizes = [8, 32], strides = [1, 1]} : vector<8x128xf32> to vector<8x32xf32>
    %167 = vector.extract_strided_slice %164 {offsets = [0, 64], sizes = [8, 32], strides = [1, 1]} : vector<8x128xf32> to vector<8x32xf32>
    %cst_40 = arith.constant 2.000000e+00 : f32
    %168 = vector.broadcast %cst_40 : f32 to vector<8x32xf32>
    %169 = arith.mulf %168, %167 : vector<8x32xf32>
    %cst_41 = arith.constant 1.000000e+00 : f32
    %170 = vector.broadcast %cst_41 : f32 to vector<8x32xf32>
    %171 = arith.subf %169, %170 : vector<8x32xf32>
    %172 = vector.extract_strided_slice %164 {offsets = [0, 96], sizes = [8, 32], strides = [1, 1]} : vector<8x128xf32> to vector<8x32xf32>
    %173 = arith.mulf %166, %130 : vector<8x32xf32>
    %174 = arith.mulf %165, %171 : vector<8x32xf32>
    %175 = arith.addf %173, %174 : vector<8x32xf32>
    %176 = math.tanh %175 : vector<8x32xf32>
    %177 = arith.mulf %172, %176 : vector<8x32xf32>
    %178 = arith.truncf %177 : vector<8x32xf32> to vector<8x32xbf16>
    %cst_42 = arith.constant dense<0.000000e+00> : vector<8x128xf32>
    %179 = tpu.matmul %178, %5, %cst_42 {dimension_numbers = #tpu.dot_dimension_numbers<[1], [0], [0], [1], [0, 0, 1, 1], [], []>} : vector<8x32xbf16>, vector<32x128xbf16>, vector<8x128xf32> -> vector<8x128xf32>
    %180 = arith.addf %156, %179 : vector<8x128xf32>
    %181 = arith.negf %180 : vector<8x128xf32>
    %182 = math.exp %181 : vector<8x128xf32>
    %cst_43 = arith.constant 1.000000e+00 : f32
    %183 = vector.broadcast %cst_43 : f32 to vector<8x128xf32>
    %184 = arith.addf %183, %182 : vector<8x128xf32>
    %185 = arith.divf %183, %184 : vector<8x128xf32>
    %186 = vector.extract_strided_slice %185 {offsets = [0, 0], sizes = [8, 32], strides = [1, 1]} : vector<8x128xf32> to vector<8x32xf32>
    %187 = vector.extract_strided_slice %185 {offsets = [0, 32], sizes = [8, 32], strides = [1, 1]} : vector<8x128xf32> to vector<8x32xf32>
    %188 = vector.extract_strided_slice %185 {offsets = [0, 64], sizes = [8, 32], strides = [1, 1]} : vector<8x128xf32> to vector<8x32xf32>
    %cst_44 = arith.constant 2.000000e+00 : f32
    %189 = vector.broadcast %cst_44 : f32 to vector<8x32xf32>
    %190 = arith.mulf %189, %188 : vector<8x32xf32>
    %cst_45 = arith.constant 1.000000e+00 : f32
    %191 = vector.broadcast %cst_45 : f32 to vector<8x32xf32>
    %192 = arith.subf %190, %191 : vector<8x32xf32>
    %193 = vector.extract_strided_slice %185 {offsets = [0, 96], sizes = [8, 32], strides = [1, 1]} : vector<8x128xf32> to vector<8x32xf32>
    %194 = arith.mulf %187, %151 : vector<8x32xf32>
    %195 = arith.mulf %186, %192 : vector<8x32xf32>
    %196 = arith.addf %194, %195 : vector<8x32xf32>
    %197 = math.tanh %196 : vector<8x32xf32>
    %198 = arith.mulf %193, %197 : vector<8x32xf32>
    %199 = arith.truncf %198 : vector<8x32xf32> to vector<8x32xbf16>
    %cst_46 = arith.constant dense<0.000000e+00> : vector<8x128xf32>
    %200 = tpu.matmul %199, %7, %cst_46 {dimension_numbers = #tpu.dot_dimension_numbers<[1], [0], [0], [1], [0, 0, 1, 1], [], []>} : vector<8x32xbf16>, vector<32x128xbf16>, vector<8x128xf32> -> vector<8x128xf32>
    %201 = arith.addf %200, %11 : vector<8x128xf32>
    %202 = vector.extract_strided_slice %16 {offsets = [32, 0], sizes = [8, 128], strides = [1, 1]} : vector<64x128xf32> to vector<8x128xf32>
    %cst_47 = arith.constant dense<0.000000e+00> : vector<8x128xf32>
    %203 = tpu.matmul %178, %3, %cst_47 {dimension_numbers = #tpu.dot_dimension_numbers<[1], [0], [0], [1], [0, 0, 1, 1], [], []>} : vector<8x32xbf16>, vector<32x128xbf16>, vector<8x128xf32> -> vector<8x128xf32>
    %204 = arith.addf %202, %203 : vector<8x128xf32>
    %205 = arith.negf %204 : vector<8x128xf32>
    %206 = math.exp %205 : vector<8x128xf32>
    %cst_48 = arith.constant 1.000000e+00 : f32
    %207 = vector.broadcast %cst_48 : f32 to vector<8x128xf32>
    %208 = arith.addf %207, %206 : vector<8x128xf32>
    %209 = arith.divf %207, %208 : vector<8x128xf32>
    %210 = vector.extract_strided_slice %209 {offsets = [0, 0], sizes = [8, 32], strides = [1, 1]} : vector<8x128xf32> to vector<8x32xf32>
    %211 = vector.extract_strided_slice %209 {offsets = [0, 32], sizes = [8, 32], strides = [1, 1]} : vector<8x128xf32> to vector<8x32xf32>
    %212 = vector.extract_strided_slice %209 {offsets = [0, 64], sizes = [8, 32], strides = [1, 1]} : vector<8x128xf32> to vector<8x32xf32>
    %cst_49 = arith.constant 2.000000e+00 : f32
    %213 = vector.broadcast %cst_49 : f32 to vector<8x32xf32>
    %214 = arith.mulf %213, %212 : vector<8x32xf32>
    %cst_50 = arith.constant 1.000000e+00 : f32
    %215 = vector.broadcast %cst_50 : f32 to vector<8x32xf32>
    %216 = arith.subf %214, %215 : vector<8x32xf32>
    %217 = vector.extract_strided_slice %209 {offsets = [0, 96], sizes = [8, 32], strides = [1, 1]} : vector<8x128xf32> to vector<8x32xf32>
    %218 = arith.mulf %211, %175 : vector<8x32xf32>
    %219 = arith.mulf %210, %216 : vector<8x32xf32>
    %220 = arith.addf %218, %219 : vector<8x32xf32>
    %221 = math.tanh %220 : vector<8x32xf32>
    %222 = arith.mulf %217, %221 : vector<8x32xf32>
    %223 = arith.truncf %222 : vector<8x32xf32> to vector<8x32xbf16>
    %cst_51 = arith.constant dense<0.000000e+00> : vector<8x128xf32>
    %224 = tpu.matmul %223, %5, %cst_51 {dimension_numbers = #tpu.dot_dimension_numbers<[1], [0], [0], [1], [0, 0, 1, 1], [], []>} : vector<8x32xbf16>, vector<32x128xbf16>, vector<8x128xf32> -> vector<8x128xf32>
    %225 = arith.addf %201, %224 : vector<8x128xf32>
    %226 = arith.negf %225 : vector<8x128xf32>
    %227 = math.exp %226 : vector<8x128xf32>
    %cst_52 = arith.constant 1.000000e+00 : f32
    %228 = vector.broadcast %cst_52 : f32 to vector<8x128xf32>
    %229 = arith.addf %228, %227 : vector<8x128xf32>
    %230 = arith.divf %228, %229 : vector<8x128xf32>
    %231 = vector.extract_strided_slice %230 {offsets = [0, 0], sizes = [8, 32], strides = [1, 1]} : vector<8x128xf32> to vector<8x32xf32>
    %232 = vector.extract_strided_slice %230 {offsets = [0, 32], sizes = [8, 32], strides = [1, 1]} : vector<8x128xf32> to vector<8x32xf32>
    %233 = vector.extract_strided_slice %230 {offsets = [0, 64], sizes = [8, 32], strides = [1, 1]} : vector<8x128xf32> to vector<8x32xf32>
    %cst_53 = arith.constant 2.000000e+00 : f32
    %234 = vector.broadcast %cst_53 : f32 to vector<8x32xf32>
    %235 = arith.mulf %234, %233 : vector<8x32xf32>
    %cst_54 = arith.constant 1.000000e+00 : f32
    %236 = vector.broadcast %cst_54 : f32 to vector<8x32xf32>
    %237 = arith.subf %235, %236 : vector<8x32xf32>
    %238 = vector.extract_strided_slice %230 {offsets = [0, 96], sizes = [8, 32], strides = [1, 1]} : vector<8x128xf32> to vector<8x32xf32>
    %239 = arith.mulf %232, %196 : vector<8x32xf32>
    %240 = arith.mulf %231, %237 : vector<8x32xf32>
    %241 = arith.addf %239, %240 : vector<8x32xf32>
    %242 = math.tanh %241 : vector<8x32xf32>
    %243 = arith.mulf %238, %242 : vector<8x32xf32>
    %244 = arith.truncf %243 : vector<8x32xf32> to vector<8x32xbf16>
    %cst_55 = arith.constant dense<0.000000e+00> : vector<8x128xf32>
    %245 = tpu.matmul %244, %7, %cst_55 {dimension_numbers = #tpu.dot_dimension_numbers<[1], [0], [0], [1], [0, 0, 1, 1], [], []>} : vector<8x32xbf16>, vector<32x128xbf16>, vector<8x128xf32> -> vector<8x128xf32>
    %246 = arith.addf %245, %11 : vector<8x128xf32>
    %247 = vector.extract_strided_slice %16 {offsets = [40, 0], sizes = [8, 128], strides = [1, 1]} : vector<64x128xf32> to vector<8x128xf32>
    %cst_56 = arith.constant dense<0.000000e+00> : vector<8x128xf32>
    %248 = tpu.matmul %223, %3, %cst_56 {dimension_numbers = #tpu.dot_dimension_numbers<[1], [0], [0], [1], [0, 0, 1, 1], [], []>} : vector<8x32xbf16>, vector<32x128xbf16>, vector<8x128xf32> -> vector<8x128xf32>
    %249 = arith.addf %247, %248 : vector<8x128xf32>
    %250 = arith.negf %249 : vector<8x128xf32>
    %251 = math.exp %250 : vector<8x128xf32>
    %cst_57 = arith.constant 1.000000e+00 : f32
    %252 = vector.broadcast %cst_57 : f32 to vector<8x128xf32>
    %253 = arith.addf %252, %251 : vector<8x128xf32>
    %254 = arith.divf %252, %253 : vector<8x128xf32>
    %255 = vector.extract_strided_slice %254 {offsets = [0, 0], sizes = [8, 32], strides = [1, 1]} : vector<8x128xf32> to vector<8x32xf32>
    %256 = vector.extract_strided_slice %254 {offsets = [0, 32], sizes = [8, 32], strides = [1, 1]} : vector<8x128xf32> to vector<8x32xf32>
    %257 = vector.extract_strided_slice %254 {offsets = [0, 64], sizes = [8, 32], strides = [1, 1]} : vector<8x128xf32> to vector<8x32xf32>
    %cst_58 = arith.constant 2.000000e+00 : f32
    %258 = vector.broadcast %cst_58 : f32 to vector<8x32xf32>
    %259 = arith.mulf %258, %257 : vector<8x32xf32>
    %cst_59 = arith.constant 1.000000e+00 : f32
    %260 = vector.broadcast %cst_59 : f32 to vector<8x32xf32>
    %261 = arith.subf %259, %260 : vector<8x32xf32>
    %262 = vector.extract_strided_slice %254 {offsets = [0, 96], sizes = [8, 32], strides = [1, 1]} : vector<8x128xf32> to vector<8x32xf32>
    %263 = arith.mulf %256, %220 : vector<8x32xf32>
    %264 = arith.mulf %255, %261 : vector<8x32xf32>
    %265 = arith.addf %263, %264 : vector<8x32xf32>
    %266 = math.tanh %265 : vector<8x32xf32>
    %267 = arith.mulf %262, %266 : vector<8x32xf32>
    %268 = arith.truncf %267 : vector<8x32xf32> to vector<8x32xbf16>
    %cst_60 = arith.constant dense<0.000000e+00> : vector<8x128xf32>
    %269 = tpu.matmul %268, %5, %cst_60 {dimension_numbers = #tpu.dot_dimension_numbers<[1], [0], [0], [1], [0, 0, 1, 1], [], []>} : vector<8x32xbf16>, vector<32x128xbf16>, vector<8x128xf32> -> vector<8x128xf32>
    %270 = arith.addf %246, %269 : vector<8x128xf32>
    %271 = arith.negf %270 : vector<8x128xf32>
    %272 = math.exp %271 : vector<8x128xf32>
    %cst_61 = arith.constant 1.000000e+00 : f32
    %273 = vector.broadcast %cst_61 : f32 to vector<8x128xf32>
    %274 = arith.addf %273, %272 : vector<8x128xf32>
    %275 = arith.divf %273, %274 : vector<8x128xf32>
    %276 = vector.extract_strided_slice %275 {offsets = [0, 0], sizes = [8, 32], strides = [1, 1]} : vector<8x128xf32> to vector<8x32xf32>
    %277 = vector.extract_strided_slice %275 {offsets = [0, 32], sizes = [8, 32], strides = [1, 1]} : vector<8x128xf32> to vector<8x32xf32>
    %278 = vector.extract_strided_slice %275 {offsets = [0, 64], sizes = [8, 32], strides = [1, 1]} : vector<8x128xf32> to vector<8x32xf32>
    %cst_62 = arith.constant 2.000000e+00 : f32
    %279 = vector.broadcast %cst_62 : f32 to vector<8x32xf32>
    %280 = arith.mulf %279, %278 : vector<8x32xf32>
    %cst_63 = arith.constant 1.000000e+00 : f32
    %281 = vector.broadcast %cst_63 : f32 to vector<8x32xf32>
    %282 = arith.subf %280, %281 : vector<8x32xf32>
    %283 = vector.extract_strided_slice %275 {offsets = [0, 96], sizes = [8, 32], strides = [1, 1]} : vector<8x128xf32> to vector<8x32xf32>
    %284 = arith.mulf %277, %241 : vector<8x32xf32>
    %285 = arith.mulf %276, %282 : vector<8x32xf32>
    %286 = arith.addf %284, %285 : vector<8x32xf32>
    %287 = math.tanh %286 : vector<8x32xf32>
    %288 = arith.mulf %283, %287 : vector<8x32xf32>
    %289 = arith.truncf %288 : vector<8x32xf32> to vector<8x32xbf16>
    %cst_64 = arith.constant dense<0.000000e+00> : vector<8x128xf32>
    %290 = tpu.matmul %289, %7, %cst_64 {dimension_numbers = #tpu.dot_dimension_numbers<[1], [0], [0], [1], [0, 0, 1, 1], [], []>} : vector<8x32xbf16>, vector<32x128xbf16>, vector<8x128xf32> -> vector<8x128xf32>
    %291 = arith.addf %290, %11 : vector<8x128xf32>
    %292 = vector.extract_strided_slice %16 {offsets = [48, 0], sizes = [8, 128], strides = [1, 1]} : vector<64x128xf32> to vector<8x128xf32>
    %cst_65 = arith.constant dense<0.000000e+00> : vector<8x128xf32>
    %293 = tpu.matmul %268, %3, %cst_65 {dimension_numbers = #tpu.dot_dimension_numbers<[1], [0], [0], [1], [0, 0, 1, 1], [], []>} : vector<8x32xbf16>, vector<32x128xbf16>, vector<8x128xf32> -> vector<8x128xf32>
    %294 = arith.addf %292, %293 : vector<8x128xf32>
    %295 = arith.negf %294 : vector<8x128xf32>
    %296 = math.exp %295 : vector<8x128xf32>
    %cst_66 = arith.constant 1.000000e+00 : f32
    %297 = vector.broadcast %cst_66 : f32 to vector<8x128xf32>
    %298 = arith.addf %297, %296 : vector<8x128xf32>
    %299 = arith.divf %297, %298 : vector<8x128xf32>
    %300 = vector.extract_strided_slice %299 {offsets = [0, 0], sizes = [8, 32], strides = [1, 1]} : vector<8x128xf32> to vector<8x32xf32>
    %301 = vector.extract_strided_slice %299 {offsets = [0, 32], sizes = [8, 32], strides = [1, 1]} : vector<8x128xf32> to vector<8x32xf32>
    %302 = vector.extract_strided_slice %299 {offsets = [0, 64], sizes = [8, 32], strides = [1, 1]} : vector<8x128xf32> to vector<8x32xf32>
    %cst_67 = arith.constant 2.000000e+00 : f32
    %303 = vector.broadcast %cst_67 : f32 to vector<8x32xf32>
    %304 = arith.mulf %303, %302 : vector<8x32xf32>
    %cst_68 = arith.constant 1.000000e+00 : f32
    %305 = vector.broadcast %cst_68 : f32 to vector<8x32xf32>
    %306 = arith.subf %304, %305 : vector<8x32xf32>
    %307 = vector.extract_strided_slice %299 {offsets = [0, 96], sizes = [8, 32], strides = [1, 1]} : vector<8x128xf32> to vector<8x32xf32>
    %308 = arith.mulf %301, %265 : vector<8x32xf32>
    %309 = arith.mulf %300, %306 : vector<8x32xf32>
    %310 = arith.addf %308, %309 : vector<8x32xf32>
    %311 = math.tanh %310 : vector<8x32xf32>
    %312 = arith.mulf %307, %311 : vector<8x32xf32>
    %313 = arith.truncf %312 : vector<8x32xf32> to vector<8x32xbf16>
    %cst_69 = arith.constant dense<0.000000e+00> : vector<8x128xf32>
    %314 = tpu.matmul %313, %5, %cst_69 {dimension_numbers = #tpu.dot_dimension_numbers<[1], [0], [0], [1], [0, 0, 1, 1], [], []>} : vector<8x32xbf16>, vector<32x128xbf16>, vector<8x128xf32> -> vector<8x128xf32>
    %315 = arith.addf %291, %314 : vector<8x128xf32>
    %316 = arith.negf %315 : vector<8x128xf32>
    %317 = math.exp %316 : vector<8x128xf32>
    %cst_70 = arith.constant 1.000000e+00 : f32
    %318 = vector.broadcast %cst_70 : f32 to vector<8x128xf32>
    %319 = arith.addf %318, %317 : vector<8x128xf32>
    %320 = arith.divf %318, %319 : vector<8x128xf32>
    %321 = vector.extract_strided_slice %320 {offsets = [0, 0], sizes = [8, 32], strides = [1, 1]} : vector<8x128xf32> to vector<8x32xf32>
    %322 = vector.extract_strided_slice %320 {offsets = [0, 32], sizes = [8, 32], strides = [1, 1]} : vector<8x128xf32> to vector<8x32xf32>
    %323 = vector.extract_strided_slice %320 {offsets = [0, 64], sizes = [8, 32], strides = [1, 1]} : vector<8x128xf32> to vector<8x32xf32>
    %cst_71 = arith.constant 2.000000e+00 : f32
    %324 = vector.broadcast %cst_71 : f32 to vector<8x32xf32>
    %325 = arith.mulf %324, %323 : vector<8x32xf32>
    %cst_72 = arith.constant 1.000000e+00 : f32
    %326 = vector.broadcast %cst_72 : f32 to vector<8x32xf32>
    %327 = arith.subf %325, %326 : vector<8x32xf32>
    %328 = vector.extract_strided_slice %320 {offsets = [0, 96], sizes = [8, 32], strides = [1, 1]} : vector<8x128xf32> to vector<8x32xf32>
    %329 = arith.mulf %322, %286 : vector<8x32xf32>
    %330 = arith.mulf %321, %327 : vector<8x32xf32>
    %331 = arith.addf %329, %330 : vector<8x32xf32>
    %332 = math.tanh %331 : vector<8x32xf32>
    %333 = arith.mulf %328, %332 : vector<8x32xf32>
    %334 = arith.truncf %333 : vector<8x32xf32> to vector<8x32xbf16>
    %cst_73 = arith.constant dense<0.000000e+00> : vector<8x128xf32>
    %335 = tpu.matmul %334, %7, %cst_73 {dimension_numbers = #tpu.dot_dimension_numbers<[1], [0], [0], [1], [0, 0, 1, 1], [], []>} : vector<8x32xbf16>, vector<32x128xbf16>, vector<8x128xf32> -> vector<8x128xf32>
    %336 = arith.addf %335, %11 : vector<8x128xf32>
    %337 = vector.extract_strided_slice %16 {offsets = [56, 0], sizes = [8, 128], strides = [1, 1]} : vector<64x128xf32> to vector<8x128xf32>
    %cst_74 = arith.constant dense<0.000000e+00> : vector<8x128xf32>
    %338 = tpu.matmul %313, %3, %cst_74 {dimension_numbers = #tpu.dot_dimension_numbers<[1], [0], [0], [1], [0, 0, 1, 1], [], []>} : vector<8x32xbf16>, vector<32x128xbf16>, vector<8x128xf32> -> vector<8x128xf32>
    %339 = arith.addf %337, %338 : vector<8x128xf32>
    %340 = arith.negf %339 : vector<8x128xf32>
    %341 = math.exp %340 : vector<8x128xf32>
    %cst_75 = arith.constant 1.000000e+00 : f32
    %342 = vector.broadcast %cst_75 : f32 to vector<8x128xf32>
    %343 = arith.addf %342, %341 : vector<8x128xf32>
    %344 = arith.divf %342, %343 : vector<8x128xf32>
    %345 = vector.extract_strided_slice %344 {offsets = [0, 0], sizes = [8, 32], strides = [1, 1]} : vector<8x128xf32> to vector<8x32xf32>
    %346 = vector.extract_strided_slice %344 {offsets = [0, 32], sizes = [8, 32], strides = [1, 1]} : vector<8x128xf32> to vector<8x32xf32>
    %347 = vector.extract_strided_slice %344 {offsets = [0, 64], sizes = [8, 32], strides = [1, 1]} : vector<8x128xf32> to vector<8x32xf32>
    %cst_76 = arith.constant 2.000000e+00 : f32
    %348 = vector.broadcast %cst_76 : f32 to vector<8x32xf32>
    %349 = arith.mulf %348, %347 : vector<8x32xf32>
    %cst_77 = arith.constant 1.000000e+00 : f32
    %350 = vector.broadcast %cst_77 : f32 to vector<8x32xf32>
    %351 = arith.subf %349, %350 : vector<8x32xf32>
    %352 = vector.extract_strided_slice %344 {offsets = [0, 96], sizes = [8, 32], strides = [1, 1]} : vector<8x128xf32> to vector<8x32xf32>
    %353 = arith.mulf %346, %310 : vector<8x32xf32>
    %354 = arith.mulf %345, %351 : vector<8x32xf32>
    %355 = arith.addf %353, %354 : vector<8x32xf32>
    %356 = math.tanh %355 : vector<8x32xf32>
    %357 = arith.mulf %352, %356 : vector<8x32xf32>
    %358 = arith.truncf %357 : vector<8x32xf32> to vector<8x32xbf16>
    %cst_78 = arith.constant dense<0.000000e+00> : vector<8x128xf32>
    %359 = tpu.matmul %358, %5, %cst_78 {dimension_numbers = #tpu.dot_dimension_numbers<[1], [0], [0], [1], [0, 0, 1, 1], [], []>} : vector<8x32xbf16>, vector<32x128xbf16>, vector<8x128xf32> -> vector<8x128xf32>
    %360 = arith.addf %336, %359 : vector<8x128xf32>
    %361 = arith.negf %360 : vector<8x128xf32>
    %362 = math.exp %361 : vector<8x128xf32>
    %cst_79 = arith.constant 1.000000e+00 : f32
    %363 = vector.broadcast %cst_79 : f32 to vector<8x128xf32>
    %364 = arith.addf %363, %362 : vector<8x128xf32>
    %365 = arith.divf %363, %364 : vector<8x128xf32>
    %366 = vector.extract_strided_slice %365 {offsets = [0, 0], sizes = [8, 32], strides = [1, 1]} : vector<8x128xf32> to vector<8x32xf32>
    %367 = vector.extract_strided_slice %365 {offsets = [0, 32], sizes = [8, 32], strides = [1, 1]} : vector<8x128xf32> to vector<8x32xf32>
    %368 = vector.extract_strided_slice %365 {offsets = [0, 64], sizes = [8, 32], strides = [1, 1]} : vector<8x128xf32> to vector<8x32xf32>
    %cst_80 = arith.constant 2.000000e+00 : f32
    %369 = vector.broadcast %cst_80 : f32 to vector<8x32xf32>
    %370 = arith.mulf %369, %368 : vector<8x32xf32>
    %cst_81 = arith.constant 1.000000e+00 : f32
    %371 = vector.broadcast %cst_81 : f32 to vector<8x32xf32>
    %372 = arith.subf %370, %371 : vector<8x32xf32>
    %373 = vector.extract_strided_slice %365 {offsets = [0, 96], sizes = [8, 32], strides = [1, 1]} : vector<8x128xf32> to vector<8x32xf32>
    %374 = arith.mulf %367, %331 : vector<8x32xf32>
    %375 = arith.mulf %366, %372 : vector<8x32xf32>
    %376 = arith.addf %374, %375 : vector<8x32xf32>
    %377 = math.tanh %376 : vector<8x32xf32>
    %378 = arith.mulf %373, %377 : vector<8x32xf32>
    %379 = arith.truncf %378 : vector<8x32xf32> to vector<8x32xbf16>
    %c240 = arith.constant 240 : index
    %c0_82 = arith.constant 0 : index
    %380 = vector.load %arg0[%c240, %c0_82] : memref<344x128xf32, #tpu.memory_space<vmem>>, vector<32x128xf32>
    %381 = arith.truncf %380 : vector<32x128xf32> to vector<32x128xbf16>
    %c272 = arith.constant 272 : index
    %c0_83 = arith.constant 0 : index
    %382 = vector.load %arg0[%c272, %c0_83] : memref<344x128xf32, #tpu.memory_space<vmem>>, vector<1x128xf32>
    %cst_84 = arith.constant dense<0.000000e+00> : vector<8x128xf32>
    %383 = tpu.matmul %379, %381, %cst_84 {dimension_numbers = #tpu.dot_dimension_numbers<[1], [0], [0], [1], [0, 0, 1, 1], [], []>} : vector<8x32xbf16>, vector<32x128xbf16>, vector<8x128xf32> -> vector<8x128xf32>
    %384 = vector.broadcast %382 : vector<1x128xf32> to vector<8x128xf32>
    %385 = arith.addf %383, %384 : vector<8x128xf32>
    %cst_85 = arith.constant dense<0xFF800000> : vector<8xf32>
    %386 = vector.multi_reduction <maximumf>, %385, %cst_85 [1] : vector<8x128xf32> to vector<8xf32>
    %387 = vector.shape_cast %386 : vector<8xf32> to vector<8x1xf32>
    %388 = vector.broadcast %387 : vector<8x1xf32> to vector<8x128xf32>
    %389 = arith.subf %385, %388 : vector<8x128xf32>
    %390 = math.exp %389 : vector<8x128xf32>
    %cst_86 = arith.constant dense<0.000000e+00> : vector<8xf32>
    %391 = vector.multi_reduction <add>, %390, %cst_86 [1] : vector<8x128xf32> to vector<8xf32>
    %392 = vector.shape_cast %391 : vector<8xf32> to vector<8x1xf32>
    %393 = tpu.reciprocal %392 {approx = true} : vector<8x1xf32> -> vector<8x1xf32>
    %394 = vector.broadcast %393 : vector<8x1xf32> to vector<8x128xf32>
    %395 = arith.mulf %390, %394 : vector<8x128xf32>
    %c0_87 = arith.constant 0 : index
    %c0_88 = arith.constant 0 : index
    %396 = vector.load %arg1[%c0_87, %c0_88] : memref<8x128xf32, #tpu.memory_space<vmem>>, vector<8x128xf32>
    tpu.vector_store %arg1[%c0_87, %c0_88], %395 {strides = array<i32>} : memref<8x128xf32, #tpu.memory_space<vmem>>, vector<8x128xf32>,
    return
  }
}

</mosaic_0001>

<bundles_post_ra>
// kernel: tpu_custom_call.1
= control target key start
LH: loop header
LB: loop body
LE: loop exit
PB: predicated region body
PF: predicated region fallthrough
CT: control target
= control target key end

     0   :  { %6 = vsyncpa [#allocation3], 0  ;;  %s2674_s0 = inlined_call_operand.hbm [shape: f32[344,128], index: 0, kind: input, shape index: {}]   ;;  %s2675_s1 = inlined_call_operand.hbm [shape: f32[8,128], index: 1, kind: output, shape index: {}]  }
   0x1   :  { %7 = vsyncpa [#allocation4], 0  ;;  %s2289_s6 = smov [#allocation2]   ;;  %s2241_s10 = scalar_lea.hbm %s2674_s0, 5504 }
   0x2   :  { %s13_s7 = sshll.u32 %s2289_s6, 4  ;;  %p2242_p0 = scmp.ne.s32.totalorder %s2674_s0, %s2241_s10  ;;  %s14_s7 = int_to_ptr.vmem [resolvable:$true] %s13_s7 }
   0x3   :  { %p2245_p1 = scmp.lt.u32.totalorder %s2241_s10, %s2674_s0 }
   0x5   :  { %p2247_p2 = pnand %p2245_p1, %p2242_p0 }
   0x7   :  { %2250 = shalt.err (!%p2247_p2)
}
   0x8   :  { %s2251_s15 = scalar_lea.vmem %s14_s7, 5504  ;;  %p2256_p4 = scmp.lt.s32.totalorder %s14_s7, %s14_s7 }
   0x9   :  { %p2252_p3 = scmp.ne.s32.totalorder %s14_s7, %s2251_s15  ;;  %p2257_p5 = scmp.lt.s32.totalorder %s2251_s15, %s2251_s15 }
   0xb   :  { %p2258_p6 = por %p2257_p5, %p2256_p4 }
   0xd   :  { %p2259_p7 = pnand %p2258_p6, %p2252_p3 }
   0xf   :  { %2262 = shalt.err (!%p2259_p7)
}
  0x10   :  { %s2290_s16 = smov 128   ;;  %s2291_s17 = smov 8  }
  0x11   :  { %19 = dma.hbm_to_vmem [thread:$0]  %s2674_s0, 5504, %s14_s7, [#allocation3], %s2290_s16, %s2290_s16, %s2291_s17  }
  0x12   :  { %2285 = dma.done.wait [#allocation3], 5504  }
  0x13   :  { %2286 = vsyncadd [#allocation3], 4294961792  ;;  %v2292_v0 = vmov 0.0   ;;  %vm2293_vm0 = vmmov 0   ;;  %v24_v1 = vld [vmem:[#allocation2] sm:$0xff]  ;;  %v25_v2 = vld [vmem:[#allocation2 + $0x8] sm:$0xff] }
  0x14   :  { %1890 = vmatprep.subr.bf16.mxu1 %v2292_v0  ;;  %1894 = vmatprep.mubr.msk.bf16.mxu1 %vm2293_vm0, %v2292_v0  ;;  %v26_v3 = vld [vmem:[#allocation2 + $0x10] sm:$0xff]  ;;  %v40_v4 = vpack.c.bf16 %v25_v2, %v24_v1  ;;  %v27_v5 = vld [vmem:[#allocation2 + $0x18] sm:$0xff]  ;;  %v28_v7 = vld [vmem:[#allocation2 + $0x20] sm:$0xff]  ;;  %v2294_v30 = vmov 0   ;;  %s2295_s0 = smov 64   ;;  %s2296_s20 = smov 32  }
  0x15   :  { %v41_v6 = vpack.c.bf16 %v27_v5, %v26_v3  ;;  %v29_v8 = vld [vmem:[#allocation2 + $0x28] sm:$0xff]  ;;  %v60_v9 = vld [vmem:[#allocation2 + $0xc0] sm:$0xff]  ;;  %v62_v12 = vld [vmem:[#allocation2 + $0xd0] sm:$0xff]  ;;  %vm153_vm1 = vcmask 261120   ;;  %s2297_s21 = smov [#allocation5]  }
  0x16   :  { %1866 = vmatprep.subr.bf16.mxu0 %v40_v4  ;;  %v61_v10 = vld [vmem:[#allocation2 + $0xc8] sm:$0xff]  ;;  %v42_v13 = vpack.c.bf16 %v29_v8, %v28_v7  ;;  %v63_v14 = vld [vmem:[#allocation2 + $0xd8] sm:$0xff]  ;;  %v30_v15 = vld [vmem:[#allocation2 + $0x30] sm:$0xff]  ;;  %s1712_s22 = sshll.u32 %s2297_s21, 4  ;;  %s1713_s22 = int_to_ptr.vmem [resolvable:$true] %s1712_s22 }
  0x17   :  { %1867 = vmatpush3.bf16.msra.mxu0 %v40_v4  ;;  %v2323_v11 = vpack.c.bf16 %v61_v10, %v60_v9  ;;  %v31_v16 = vld [vmem:[#allocation2 + $0x38] sm:$0xff]  ;;  %v2326_v17 = vpack.c.bf16 %v63_v14, %v62_v12  ;;  %v48_v18 = vld [vmem:[#allocation2 + $0x80] sm:$0xff]  ;;  %v49_v19 = vld [vmem:[#allocation2 + $0x88] sm:$0xff]  ;;  %s2263_s23 = scalar_lea.vmem %s1713_s22, 128  ;;  %p2268_p9 = scmp.lt.s32.totalorder %s1713_s22, %s1713_s22 }
  0x18   :  { %1868 = vmatprep.subr.bf16.mxu0 %v41_v6  ;;  %v72_v20 = vld [vmem:[#allocation2 + $0x118] sm:$0xff]  ;;  %v73_v21 = vld [vmem:[#allocation2 + $0x120] sm:$0xff]  ;;  %v43_v22 = vpack.c.bf16 %v31_v16, %v30_v15  ;;  %v33_v25 = vld [vmem:[#allocation2 + $0x48] sm:$0xff]  ;;  %v2330_v26 = vpack.c.bf16 %v49_v19, %v48_v18  ;;  %p2264_p8 = scmp.ne.s32.totalorder %s1713_s22, %s2263_s23  ;;  %p2269_p10 = scmp.lt.s32.totalorder %s2263_s23, %s2263_s23 }
  0x19   :  { %1891 = vmatpush3.bf16.msra.mxu1 %v2323_v11  ;;  %v80_v23 = vpack.c.bf16 %v73_v21, %v72_v20  ;;  %v32_v24 = vld [vmem:[#allocation2 + $0x40] sm:$0xff]  ;;  %v50_v27 = vld [vmem:[#allocation2 + $0x90] sm:$0xff]  ;;  %v51_v28 = vld [vmem:[#allocation2 + $0x98] sm:$0xff] }
  0x1a   :  { %1892 = vmatprep.subr.bf16.mxu1 %v2292_v0  ;;  %v44_v29 = vpack.c.bf16 %v33_v25, %v32_v24  ;;  %v34_v31 = vld [vmem:[#allocation2 + $0x50] sm:$0xff]  ;;  %v35_v32 = vld [vmem:[#allocation2 + $0x58] sm:$0xff]  ;;  %v2334_v33 = vpack.c.bf16 %v51_v28, %v50_v27  ;;  %v36_v35 = vld [vmem:[#allocation2 + $0x60] sm:$0xff]  ;;  %p2270_p11 = por %p2269_p10, %p2268_p9 }
  0x1b   :  { %1869 = vmatpush3.bf16.msra.mxu0 %v41_v6  ;;  %1882 = vmatprep.mubr.bf16.mxu0 %v80_v23  ;;  %v45_v34 = vpack.c.bf16 %v35_v32, %v34_v31  ;;  %v37_v36 = vld [vmem:[#allocation2 + $0x68] sm:$0xff]  ;;  %v38_v38 = vld [vmem:[#allocation2 + $0x70] sm:$0xff]  ;;  %v39_v39 = vld [vmem:[#allocation2 + $0x78] sm:$0xff] }
  0x1c   :  { %1870 = vmatprep.subr.bf16.mxu0 %v42_v13  ;;  %v46_v37 = vpack.c.bf16 %v37_v36, %v36_v35  ;;  %v47_v40 = vpack.c.bf16 %v39_v39, %v38_v38  ;;  %v74_v41 = vld [vmem:[#allocation2 + $0x128] sm:$0xff]  ;;  %v75_v42 = vld [vmem:[#allocation2 + $0x130] sm:$0xff]  ;;  %v2348_v48 = vld [vmem:[#allocation2 + $0xe0] ss:$0 sm:$0xff]  ;;  %p2271_p12 = pnand %p2270_p11, %p2264_p8 }
  0x1d   :  { %1893 = vmatpush3.bf16.msra.mxu1 %v2326_v17  ;;  %v81_v43 = vpack.c.bf16 %v75_v42, %v74_v41  ;;  %v54_v3 = vld [vmem:[#allocation2 + $0xa0] sm:$0xff]  ;;  %v55_v4 = vld [vmem:[#allocation2 + $0xa8] sm:$0xff]  ;;  %v56_v5 = vld [vmem:[#allocation2 + $0xb0] sm:$0xff] }
  0x1e   :  { %1898 = vmatprep.subr.bf16.mxu1 %v2292_v0  ;;  %v2362_v6 = vpack.c.bf16 %v55_v4, %v54_v3  ;;  %v57_v7 = vld [vmem:[#allocation2 + $0xb8] sm:$0xff]  ;;  %v2379_v15 = vld [vmem:[#allocation2 + $0xe8] ss:$0 sm:$0xff] }
  0x1f   :  { %1871 = vmatpush3.bf16.msra.mxu0 %v42_v13  ;;  %v2365_v8 = vpack.c.bf16 %v57_v7, %v56_v5 }
  0x20   :  { %1872 = vmatprep.subr.bf16.mxu0 %v43_v22  ;;  %1895 = vmatmul.mubr.bf16.vlgmr.msra.gmra.mrb[0].mxu1 %v2294_v30 }
  0x21   :  { %1899 = vmatpush3.bf16.msra.mxu1 %v2330_v26  ;;  %1902 = vmatprep.mubr.msk.bf16.mxu1 %vm2293_vm0, %v2292_v0 }
  0x22   :  { %1900 = vmatprep.subr.bf16.mxu1 %v2292_v0 }
  0x23   :  { %1873 = vmatpush3.bf16.msra.mxu0 %v43_v22 }
  0x24   :  { %1874 = vmatprep.subr.bf16.mxu0 %v44_v29 }
  0x25   :  { %1901 = vmatpush3.bf16.msra.mxu1 %v2334_v33 }
  0x26   :  { %1906 = vmatprep.subr.bf16.mxu1 %v2292_v0 }
  0x27   :  { %1875 = vmatpush3.bf16.msra.mxu0 %v44_v29 }
  0x28   :  { %1876 = vmatprep.subr.bf16.mxu0 %v45_v34  ;;  %1903 = vmatmul.mubr.bf16.vlgmr.msra.gmra.mrb[4].mxu1 %v2294_v30 }
  0x29   :  { %1910 = vmatprep.mubr.msk.bf16.mxu1 %vm2293_vm0, %v2292_v0  ;;  %1907 = vmatpush3.bf16.msra.mxu1 %v2362_v6 }
  0x2a   :  { %1908 = vmatprep.subr.bf16.mxu1 %v2292_v0 }
  0x2b   :  { %1877 = vmatpush3.bf16.msra.mxu0 %v45_v34 }
  0x2c   :  { %1878 = vmatprep.subr.bf16.mxu0 %v46_v37 }
  0x2d   :  { %1909 = vmatpush3.bf16.msra.mxu1 %v2365_v8 }
  0x2e   :  { %1914 = vmatprep.subr.bf16.mxu1 %v2292_v0 }
  0x2f   :  { %1879 = vmatpush3.bf16.msra.mxu0 %v46_v37 }
  0x30   :  { %1880 = vmatprep.subr.bf16.mxu0 %v47_v40 }
  0x33   :  { %1881 = vmatpush3.bf16.msra.mxu0 %v47_v40 }
  0x34   :  { %1938 = vmatprep.subr.bf16.mxu0 %v2292_v0 }
  0x36   :  { %1883 = vmatmul.mubr.bf16.vlgmr.msra.gmra.mrb[0].mxu0 %v81_v43 }
  0x37   :  { %1939 = vmatpush3.bf16.msra.mxu0 %v2323_v11 }
  0x38   :  { %1940 = vmatprep.subr.bf16.mxu0 %v2292_v0 }
  0x3b   :  { %1941 = vmatpush3.bf16.msra.mxu0 %v2326_v17 }
  0x3c   :  { %1946 = vmatprep.subr.bf16.mxu0 %v2292_v0 }
  0xfb   :  { %v231_v44 = vpop.f32.mrb[4].mxu1 }
  0xfc   :  { %v1904_v45 = vpop.f32.mrb[5].mxu1 }
  0xfd   :  { %v234_v46 = vpop.f32.mrb[6].mxu1 }
  0xfe   :  { %v1905_v47 = vpop.f32.mrb[7].mxu1 }
 0x109   :  { %v2350_v49 = vpop.f32.mrb[0].mxu0 }
 0x10a   :  { %v122_v50 = vpop.f32.mrb[1].mxu0 }
 0x10b   :  { %v123_v51 = vadd.f32 %v2348_v48, %v122_v50  ;;  %v2353_v52 = vpop.f32.mrb[2].mxu0 }
 0x10c   :  { %v2355_v53 = vpop.f32.mrb[3].mxu0 }
 0x10d   :  { %v237_v54 = vadd.f32 %v231_v44, %v123_v51  ;;  %v126_v40 = vadd.f32 %v2348_v48, %v2355_v53 }
 0x10f   :  { %v1723_v55 = vmul.f32 -1.442695, %v237_v54 }
 0x111   :  { %2139 = vpow2.f32 %v1723_v55 }
 0x11b   :  { %v2140_v56 = vpop.eup %2139 }
 0x11c   :  { %v241_v57 = vadd.f32 1.0, %v2140_v56 }
 0x11e   :  { %2141 = vrcp.f32 %v241_v57 }
 0x128   :  { %v2142_v58 = vpop.eup %2141 }
 0x129   :  { %v244_v59 = vmul.f32 2.0, %v2142_v58  ;;  %v246_v63 = vmul.f32 0.0, %v2142_v58 }
 0x12b   :  { %v1724_v60 = vadd.f32 -1.0, %v244_v59 }
 0x12d   :  { %248 = vrot.lane.b32.xlu0 %v1724_v60, %s2295_s0 }
 0x19f   :  { %v249_v61 = vpop.permute.xlu0 %248 }
 0x1a0   :  { %v251_v62 = vmul.f32 %v2142_v58, %v249_v61 }
 0x1a2   :  { %253 = vrot.lane.b32.xlu0 %v251_v62, %s2296_s20 }
 0x214   :  { %v254_v1 = vpop.permute.xlu0 %253 }
 0x215   :  { %v2359_v2 = vadd.f32 %v254_v1, %v246_v63 }
 0x217   :  { %2143 = vtanh.f32 %v2359_v2 }
 0x221   :  { %v2144_v9 = vpop.eup %2143 }
 0x222   :  { %259 = vrot.lane.b32.xlu1 %v2144_v9, %s2295_s0 }
 0x294   :  { %v260_v10 = vpop.permute.xlu1 %259 }
 0x295   :  { %v262_v12 = vmul.f32 %v2142_v58, %v260_v10 }
 0x297   :  { %v263_v13 = vpack.c.bf16 %v262_v12, %v262_v12 }
 0x299   :  { %265 = vrot.lane.b32.xlu1 %v263_v13, %s2296_s20 }
 0x30b   :  { %v266_v14 = vpop.permute.xlu1 %265 }
 0x30c   :  { %1911 = vmatmul.mubr.msk.bf16.vlgmr.msra.gmra.mrb[0].mxu1 %vm153_vm1, %v266_v14 }
 0x30d   :  { %1915 = vmatpush3.bf16.msra.mxu1 %v2323_v11  ;;  %1918 = vmatprep.mubr.msk.bf16.mxu1 %vm2293_vm0, %v2292_v0 }
 0x30e   :  { %1916 = vmatprep.subr.bf16.mxu1 %v2292_v0 }
 0x311   :  { %1917 = vmatpush3.bf16.msra.mxu1 %v2326_v17 }
 0x312   :  { %1922 = vmatprep.subr.bf16.mxu1 %v2292_v0 }
 0x3df   :  { %v304_v16 = vpop.f32.mrb[0].mxu1 }
 0x3e0   :  { %v2090_v18 = vadd.f32 %v2379_v15, %v304_v16  ;;  %v1912_v19 = vpop.f32.mrb[1].mxu1 }
 0x3e1   :  { %v307_v20 = vpop.f32.mrb[2].mxu1 }
 0x3e2   :  { %v1726_v21 = vmul.f32 -1.442695, %v2090_v18  ;;  %v1913_v22 = vpop.f32.mrb[3].mxu1 }
 0x3e4   :  { %2145 = vpow2.f32 %v1726_v21 }
 0x3ee   :  { %v2146_v23 = vpop.eup %2145 }
 0x3ef   :  { %v314_v24 = vadd.f32 1.0, %v2146_v23  ;;  %v76_v23 = vld [vmem:[#allocation2 + $0x138] sm:$0xff] }
 0x3f1   :  { %2147 = vrcp.f32 %v314_v24  ;;  %v77_v24 = vld [vmem:[#allocation2 + $0x140] sm:$0xff] }
 0x3fb   :  { %v2148_v25 = vpop.eup %2147 }
 0x3fc   :  { %v317_v27 = vmul.f32 2.0, %v2148_v25  ;;  %v319_v31 = vmul.f32 0.0, %v2148_v25 }
 0x3fe   :  { %v1727_v28 = vadd.f32 -1.0, %v317_v27  ;;  %v82_v27 = vpack.c.bf16 %v77_v24, %v76_v23 }
 0x400   :  { %321 = vrot.lane.b32.xlu0 %v1727_v28, %s2295_s0  ;;  %v79_v28 = vld [vmem:[#allocation2 + $0x150] sm:$0xff]  ;;  %1886 = vmatprep.mubr.bf16.mxu0 %v82_v27 }
 0x472   :  { %v322_v29 = vpop.permute.xlu0 %321 }
 0x473   :  { %v324_v30 = vmul.f32 %v2148_v25, %v322_v29 }
 0x475   :  { %326 = vrot.lane.b32.xlu1 %v324_v30, %s2296_s20 }
 0x4e7   :  { %v327_v32 = vpop.permute.xlu1 %326 }
 0x4e8   :  { %v2384_v34 = vadd.f32 %v327_v32, %v319_v31 }
 0x4ea   :  { %2149 = vtanh.f32 %v2384_v34 }
 0x4f4   :  { %v2150_v35 = vpop.eup %2149 }
 0x4f5   :  { %332 = vrot.lane.b32.xlu0 %v2150_v35, %s2295_s0 }
 0x567   :  { %v333_v36 = vpop.permute.xlu0 %332 }
 0x568   :  { %v335_v37 = vmul.f32 %v2148_v25, %v333_v36  ;;  %v78_v25 = vld [vmem:[#allocation2 + $0x148] sm:$0xff] }
 0x569   :  { %v83_v29 = vpack.c.bf16 %v79_v28, %v78_v25 }
 0x56a   :  { %v336_v38 = vpack.c.bf16 %v335_v37, %v335_v37 }
 0x56b   :  { %1887 = vmatmul.mubr.bf16.gmra.mrb[4].mxu0 %v83_v29 }
 0x56c   :  { %338 = vrot.lane.b32.xlu1 %v336_v38, %s2296_s20  ;;  %1942 = vmatprep.mubr.msk.bf16.mxu0 %vm2293_vm0, %v2292_v0 }
 0x5de   :  { %v339_v39 = vpop.permute.xlu1 %338 }
 0x5df   :  { %1919 = vmatmul.mubr.msk.bf16.vlgmr.msra.gmra.mrb[8].mxu1 %vm153_vm1, %v339_v39 }
 0x5e0   :  { %1923 = vmatpush3.bf16.msra.mxu1 %v2330_v26  ;;  %1926 = vmatprep.mubr.msk.bf16.mxu1 %vm2293_vm0, %v2292_v0 }
 0x5e1   :  { %1924 = vmatprep.subr.bf16.mxu1 %v2292_v0 }
 0x5e4   :  { %1925 = vmatpush3.bf16.msra.mxu1 %v2334_v33 }
 0x5e5   :  { %1930 = vmatprep.subr.bf16.mxu1 %v2292_v0 }
 0x5e7   :  { %1927 = vmatmul.mubr.msk.bf16.vlgmr.msra.gmra.mrb[12].mxu1 %vm153_vm1, %v266_v14 }
 0x5e8   :  { %1931 = vmatpush3.bf16.msra.mxu1 %v2362_v6  ;;  %1934 = vmatprep.mubr.msk.bf16.mxu1 %vm2293_vm0, %v2292_v0 }
 0x5e9   :  { %1932 = vmatprep.subr.bf16.mxu1 %v2292_v0 }
 0x5ec   :  { %1933 = vmatpush3.bf16.msra.mxu1 %v2365_v8 }
 0x5ed   :  { %1962 = vmatprep.subr.bf16.mxu1 %v2292_v0 }
 0x63e   :  { %v2431_v35 = vpop.f32.mrb[4].mxu0 }
 0x63f   :  { %v2433_v36 = vpop.f32.mrb[5].mxu0 }
 0x640   :  { %v2435_v37 = vpop.f32.mrb[6].mxu0 }
 0x641   :  { %v2437_v38 = vpop.f32.mrb[7].mxu0 }
 0x6ba   :  { %v417_v41 = vpop.f32.mrb[12].mxu1 }
 0x6bb   :  { %v423_v42 = vadd.f32 %v417_v41, %v126_v40  ;;  %v1928_v43 = vpop.f32.mrb[13].mxu1  ;;  %v131_v40 = vadd.f32 %v2350_v49, %v2348_v48 }
 0x6bc   :  { %v420_v44 = vpop.f32.mrb[14].mxu1 }
 0x6bd   :  { %v1730_v45 = vmul.f32 -1.442695, %v423_v42  ;;  %v1929_v46 = vpop.f32.mrb[15].mxu1 }
 0x6bf   :  { %2151 = vpow2.f32 %v1730_v45 }
 0x6c9   :  { %v2152_v47 = vpop.eup %2151 }
 0x6ca   :  { %v427_v50 = vadd.f32 1.0, %v2152_v47 }
 0x6cc   :  { %2153 = vrcp.f32 %v427_v50 }
 0x6d6   :  { %v2154_v51 = vpop.eup %2153 }
 0x6d7   :  { %v430_v54 = vmul.f32 2.0, %v2154_v51  ;;  %v432_v53 = vmul.f32 %v2154_v51, %v2359_v2 }
 0x6d9   :  { %v1731_v55 = vadd.f32 -1.0, %v430_v54 }
 0x6db   :  { %434 = vrot.lane.b32.xlu0 %v1731_v55, %s2295_s0 }
 0x74d   :  { %v435_v56 = vpop.permute.xlu0 %434 }
 0x74e   :  { %v437_v57 = vmul.f32 %v2154_v51, %v435_v56 }
 0x750   :  { %439 = vrot.lane.b32.xlu1 %v437_v57, %s2296_s20 }
 0x7c2   :  { %v440_v58 = vpop.permute.xlu1 %439 }
 0x7c3   :  { %v2408_v59 = vadd.f32 %v440_v58, %v432_v53 }
 0x7c5   :  { %2155 = vtanh.f32 %v2408_v59 }
 0x7cf   :  { %v2156_v60 = vpop.eup %2155 }
 0x7d0   :  { %445 = vrot.lane.b32.xlu0 %v2156_v60, %s2295_s0 }
 0x842   :  { %v446_v61 = vpop.permute.xlu0 %445 }
 0x843   :  { %v448_v62 = vmul.f32 %v2154_v51, %v446_v61 }
 0x845   :  { %v449_v63 = vpack.c.bf16 %v448_v62, %v448_v62 }
 0x847   :  { %451 = vrot.lane.b32.xlu1 %v449_v63, %s2296_s20 }
 0x8b9   :  { %v452_v1 = vpop.permute.xlu1 %451 }
 0x8ba   :  { %1935 = vmatmul.mubr.msk.bf16.vlgmr.msra.gmra.mrb[8].mxu1 %vm153_vm1, %v452_v1 }
 0x8bb   :  { %1963 = vmatpush3.bf16.msra.mxu1 %v2323_v11  ;;  %1966 = vmatprep.mubr.msk.bf16.mxu1 %vm2293_vm0, %v2292_v0 }
 0x8bc   :  { %1964 = vmatprep.subr.bf16.mxu1 %v2292_v0 }
 0x8bf   :  { %1965 = vmatpush3.bf16.msra.mxu1 %v2326_v17 }
 0x8c0   :  { %1970 = vmatprep.subr.bf16.mxu1 %v2292_v0 }
 0x98d   :  { %v490_v2 = vpop.f32.mrb[8].mxu1 }
 0x98e   :  { %v2091_v3 = vadd.f32 %v2379_v15, %v490_v2  ;;  %v1936_v4 = vpop.f32.mrb[9].mxu1 }
 0x98f   :  { %v493_v5 = vpop.f32.mrb[10].mxu1 }
 0x990   :  { %v1733_v7 = vmul.f32 -1.442695, %v2091_v3  ;;  %v1937_v9 = vpop.f32.mrb[11].mxu1 }
 0x992   :  { %2157 = vpow2.f32 %v1733_v7 }
 0x99c   :  { %v2158_v10 = vpop.eup %2157 }
 0x99d   :  { %v500_v12 = vadd.f32 1.0, %v2158_v10 }
 0x99f   :  { %2159 = vrcp.f32 %v500_v12 }
 0x9a9   :  { %v2160_v13 = vpop.eup %2159 }
 0x9aa   :  { %v503_v14 = vmul.f32 2.0, %v2160_v13  ;;  %v505_v20 = vmul.f32 %v2160_v13, %v2384_v34 }
 0x9ac   :  { %v1734_v16 = vadd.f32 -1.0, %v503_v14 }
 0x9ae   :  { %507 = vrot.lane.b32.xlu0 %v1734_v16, %s2295_s0 }
 0xa20   :  { %v508_v18 = vpop.permute.xlu0 %507 }
 0xa21   :  { %v510_v19 = vmul.f32 %v2160_v13, %v508_v18 }
 0xa23   :  { %512 = vrot.lane.b32.xlu1 %v510_v19, %s2296_s20 }
 0xa95   :  { %v513_v21 = vpop.permute.xlu1 %512 }
 0xa96   :  { %v2424_v22 = vadd.f32 %v513_v21, %v505_v20 }
 0xa98   :  { %2161 = vtanh.f32 %v2424_v22 }
 0xaa2   :  { %v2162_v30 = vpop.eup %2161 }
 0xaa3   :  { %518 = vrot.lane.b32.xlu0 %v2162_v30, %s2295_s0 }
 0xb15   :  { %v519_v31 = vpop.permute.xlu0 %518 }
 0xb16   :  { %v521_v32 = vmul.f32 %v2160_v13, %v519_v31 }
 0xb18   :  { %v522_v34 = vpack.c.bf16 %v521_v32, %v521_v32 }
 0xb1a   :  { %524 = vrot.lane.b32.xlu1 %v522_v34, %s2296_s20 }
 0xb8c   :  { %v525_v39 = vpop.permute.xlu1 %524 }
 0xb8d   :  { %1943 = vmatmul.mubr.msk.bf16.vlgmr.msra.gmra.mrb[8].mxu0 %vm153_vm1, %v525_v39 }
 0xb8e   :  { %1947 = vmatpush3.bf16.msra.mxu0 %v2330_v26  ;;  %1950 = vmatprep.mubr.msk.bf16.mxu0 %vm2293_vm0, %v2292_v0 }
 0xb8f   :  { %1948 = vmatprep.subr.bf16.mxu0 %v2292_v0 }
 0xb92   :  { %1949 = vmatpush3.bf16.msra.mxu0 %v2334_v33 }
 0xb93   :  { %1954 = vmatprep.subr.bf16.mxu0 %v2292_v0 }
 0xb95   :  { %1951 = vmatmul.mubr.msk.bf16.vlgmr.msra.gmra.mrb[12].mxu0 %vm153_vm1, %v452_v1 }
 0xb96   :  { %1955 = vmatpush3.bf16.msra.mxu0 %v2362_v6  ;;  %1958 = vmatprep.mubr.msk.bf16.mxu0 %vm2293_vm0, %v2292_v0 }
 0xb97   :  { %1956 = vmatprep.subr.bf16.mxu0 %v2292_v0 }
 0xb9a   :  { %1957 = vmatpush3.bf16.msra.mxu0 %v2365_v8 }
 0xb9b   :  { %1986 = vmatprep.subr.bf16.mxu0 %v2292_v0 }
 0xc68   :  { %v603_v41 = vpop.f32.mrb[12].mxu0 }
 0xc69   :  { %v609_v42 = vadd.f32 %v603_v41, %v131_v40  ;;  %v1952_v43 = vpop.f32.mrb[13].mxu0 }
 0xc6a   :  { %v606_v44 = vpop.f32.mrb[14].mxu0 }
 0xc6b   :  { %v1737_v45 = vmul.f32 -1.442695, %v609_v42  ;;  %v1953_v46 = vpop.f32.mrb[15].mxu0 }
 0xc6d   :  { %2163 = vpow2.f32 %v1737_v45 }
 0xc77   :  { %v2164_v47 = vpop.eup %2163 }
 0xc78   :  { %v613_v50 = vadd.f32 1.0, %v2164_v47 }
 0xc7a   :  { %2165 = vrcp.f32 %v613_v50 }
 0xc84   :  { %v2166_v51 = vpop.eup %2165 }
 0xc85   :  { %v616_v54 = vmul.f32 2.0, %v2166_v51  ;;  %v618_v49 = vmul.f32 %v2166_v51, %v2408_v59 }
 0xc87   :  { %v1738_v55 = vadd.f32 -1.0, %v616_v54 }
 0xc89   :  { %620 = vrot.lane.b32.xlu0 %v1738_v55, %s2295_s0 }
 0xcfb   :  { %v621_v56 = vpop.permute.xlu0 %620 }
 0xcfc   :  { %v623_v57 = vmul.f32 %v2166_v51, %v621_v56 }
 0xcfe   :  { %625 = vrot.lane.b32.xlu1 %v623_v57, %s2296_s20 }
 0xd70   :  { %v626_v53 = vpop.permute.xlu1 %625 }
 0xd71   :  { %v2458_v58 = vadd.f32 %v626_v53, %v618_v49 }
 0xd73   :  { %2167 = vtanh.f32 %v2458_v58 }
 0xd7d   :  { %v2168_v60 = vpop.eup %2167 }
 0xd7e   :  { %631 = vrot.lane.b32.xlu0 %v2168_v60, %s2295_s0 }
 0xdf0   :  { %v632_v61 = vpop.permute.xlu0 %631 }
 0xdf1   :  { %v634_v62 = vmul.f32 %v2166_v51, %v632_v61 }
 0xdf3   :  { %v635_v63 = vpack.c.bf16 %v634_v62, %v634_v62 }
 0xdf5   :  { %637 = vrot.lane.b32.xlu1 %v635_v63, %s2296_s20 }
 0xe67   :  { %v638_v1 = vpop.permute.xlu1 %637 }
 0xe68   :  { %1959 = vmatmul.mubr.msk.bf16.vlgmr.msra.gmra.mrb[8].mxu0 %vm153_vm1, %v638_v1 }
 0xe69   :  { %1987 = vmatpush3.bf16.msra.mxu0 %v2323_v11  ;;  %1990 = vmatprep.mubr.msk.bf16.mxu0 %vm2293_vm0, %v2292_v0 }
 0xe6a   :  { %1988 = vmatprep.subr.bf16.mxu0 %v2292_v0 }
 0xe6d   :  { %1989 = vmatpush3.bf16.msra.mxu0 %v2326_v17 }
 0xe6e   :  { %1994 = vmatprep.subr.bf16.mxu0 %v2292_v0 }
 0xf3b   :  { %v676_v59 = vpop.f32.mrb[8].mxu0 }
 0xf3c   :  { %v2092_v2 = vadd.f32 %v2379_v15, %v676_v59  ;;  %v1960_v3 = vpop.f32.mrb[9].mxu0 }
 0xf3d   :  { %v679_v4 = vpop.f32.mrb[10].mxu0 }
 0xf3e   :  { %v1740_v5 = vmul.f32 -1.442695, %v2092_v2  ;;  %v1961_v7 = vpop.f32.mrb[11].mxu0 }
 0xf40   :  { %2169 = vpow2.f32 %v1740_v5 }
 0xf4a   :  { %v2170_v9 = vpop.eup %2169 }
 0xf4b   :  { %v686_v10 = vadd.f32 1.0, %v2170_v9 }
 0xf4d   :  { %2171 = vrcp.f32 %v686_v10 }
 0xf57   :  { %v2172_v12 = vpop.eup %2171 }
 0xf58   :  { %v689_v13 = vmul.f32 2.0, %v2172_v12  ;;  %v691_v19 = vmul.f32 %v2172_v12, %v2424_v22  ;;  %v134_v22 = vadd.f32 %v2353_v52, %v2348_v48 }
 0xf5a   :  { %v1741_v14 = vadd.f32 -1.0, %v689_v13 }
 0xf5c   :  { %693 = vrot.lane.b32.xlu0 %v1741_v14, %s2295_s0 }
 0xfce   :  { %v694_v16 = vpop.permute.xlu0 %693 }
 0xfcf   :  { %v696_v18 = vmul.f32 %v2172_v12, %v694_v16 }
 0xfd1   :  { %698 = vrot.lane.b32.xlu1 %v696_v18, %s2296_s20 }
0x1043   :  { %v699_v20 = vpop.permute.xlu1 %698 }
0x1044   :  { %v2474_v21 = vadd.f32 %v699_v20, %v691_v19  ;;  %v139_v19 = vadd.f32 %v2348_v48, %v2433_v36 }
0x1046   :  { %2173 = vtanh.f32 %v2474_v21 }
0x1050   :  { %v2174_v23 = vpop.eup %2173 }
0x1051   :  { %704 = vrot.lane.b32.xlu0 %v2174_v23, %s2295_s0 }
0x10c3   :  { %v705_v24 = vpop.permute.xlu0 %704 }
0x10c4   :  { %v707_v25 = vmul.f32 %v2172_v12, %v705_v24 }
0x10c6   :  { %v708_v27 = vpack.c.bf16 %v707_v25, %v707_v25 }
0x10c8   :  { %710 = vrot.lane.b32.xlu1 %v708_v27, %s2296_s20 }
0x113a   :  { %v711_v28 = vpop.permute.xlu1 %710 }
0x113b   :  { %1967 = vmatmul.mubr.msk.bf16.vlgmr.msra.gmra.mrb[16].mxu1 %vm153_vm1, %v711_v28 }
0x113c   :  { %1971 = vmatpush3.bf16.msra.mxu1 %v2330_v26  ;;  %1974 = vmatprep.mubr.msk.bf16.mxu1 %vm2293_vm0, %v2292_v0 }
0x113d   :  { %1972 = vmatprep.subr.bf16.mxu1 %v2292_v0 }
0x1140   :  { %1973 = vmatpush3.bf16.msra.mxu1 %v2334_v33 }
0x1141   :  { %1978 = vmatprep.subr.bf16.mxu1 %v2292_v0 }
0x1143   :  { %1975 = vmatmul.mubr.msk.bf16.vlgmr.msra.gmra.mrb[20].mxu1 %vm153_vm1, %v638_v1 }
0x1144   :  { %1979 = vmatpush3.bf16.msra.mxu1 %v2362_v6  ;;  %1982 = vmatprep.mubr.msk.bf16.mxu1 %vm2293_vm0, %v2292_v0 }
0x1145   :  { %1980 = vmatprep.subr.bf16.mxu1 %v2292_v0 }
0x1148   :  { %1981 = vmatpush3.bf16.msra.mxu1 %v2365_v8 }
0x1149   :  { %2010 = vmatprep.subr.bf16.mxu1 %v2292_v0 }
0x1216   :  { %v789_v29 = vpop.f32.mrb[20].mxu1 }
0x1217   :  { %v795_v30 = vadd.f32 %v789_v29, %v134_v22  ;;  %v1976_v31 = vpop.f32.mrb[21].mxu1 }
0x1218   :  { %v792_v32 = vpop.f32.mrb[22].mxu1 }
0x1219   :  { %v1744_v34 = vmul.f32 -1.442695, %v795_v30  ;;  %v1977_v39 = vpop.f32.mrb[23].mxu1 }
0x121b   :  { %2175 = vpow2.f32 %v1744_v34 }
0x1225   :  { %v2176_v40 = vpop.eup %2175 }
0x1226   :  { %v799_v41 = vadd.f32 1.0, %v2176_v40 }
0x1228   :  { %2177 = vrcp.f32 %v799_v41 }
0x1232   :  { %v2178_v42 = vpop.eup %2177 }
0x1233   :  { %v802_v43 = vmul.f32 2.0, %v2178_v42  ;;  %v804_v52 = vmul.f32 %v2178_v42, %v2458_v58 }
0x1235   :  { %v1745_v44 = vadd.f32 -1.0, %v802_v43 }
0x1237   :  { %806 = vrot.lane.b32.xlu0 %v1745_v44, %s2295_s0 }
0x12a9   :  { %v807_v45 = vpop.permute.xlu0 %806 }
0x12aa   :  { %v809_v46 = vmul.f32 %v2178_v42, %v807_v45 }
0x12ac   :  { %811 = vrot.lane.b32.xlu1 %v809_v46, %s2296_s20 }
0x131e   :  { %v812_v47 = vpop.permute.xlu1 %811 }
0x131f   :  { %v2498_v50 = vadd.f32 %v812_v47, %v804_v52 }
0x1321   :  { %2179 = vtanh.f32 %v2498_v50 }
0x132b   :  { %v2180_v51 = vpop.eup %2179 }
0x132c   :  { %817 = vrot.lane.b32.xlu0 %v2180_v51, %s2295_s0 }
0x139e   :  { %v818_v54 = vpop.permute.xlu0 %817 }
0x139f   :  { %v820_v55 = vmul.f32 %v2178_v42, %v818_v54 }
0x13a1   :  { %v821_v56 = vpack.c.bf16 %v820_v55, %v820_v55 }
0x13a3   :  { %823 = vrot.lane.b32.xlu1 %v821_v56, %s2296_s20 }
0x1415   :  { %v824_v57 = vpop.permute.xlu1 %823 }
0x1416   :  { %1983 = vmatmul.mubr.msk.bf16.vlgmr.msra.gmra.mrb[16].mxu1 %vm153_vm1, %v824_v57 }
0x1417   :  { %2011 = vmatpush3.bf16.msra.mxu1 %v2323_v11  ;;  %2014 = vmatprep.mubr.msk.bf16.mxu1 %vm2293_vm0, %v2292_v0 }
0x1418   :  { %2012 = vmatprep.subr.bf16.mxu1 %v2292_v0 }
0x141b   :  { %2013 = vmatpush3.bf16.msra.mxu1 %v2326_v17 }
0x141c   :  { %2018 = vmatprep.subr.bf16.mxu1 %v2292_v0 }
0x14e9   :  { %v862_v49 = vpop.f32.mrb[16].mxu1 }
0x14ea   :  { %v2093_v53 = vadd.f32 %v2379_v15, %v862_v49  ;;  %v1984_v58 = vpop.f32.mrb[17].mxu1 }
0x14eb   :  { %v865_v60 = vpop.f32.mrb[18].mxu1 }
0x14ec   :  { %v1747_v61 = vmul.f32 -1.442695, %v2093_v53  ;;  %v1985_v62 = vpop.f32.mrb[19].mxu1 }
0x14ee   :  { %2181 = vpow2.f32 %v1747_v61 }
0x14f8   :  { %v2182_v63 = vpop.eup %2181 }
0x14f9   :  { %v872_v1 = vadd.f32 1.0, %v2182_v63 }
0x14fb   :  { %2183 = vrcp.f32 %v872_v1 }
0x1505   :  { %v2184_v59 = vpop.eup %2183 }
0x1506   :  { %v875_v2 = vmul.f32 2.0, %v2184_v59  ;;  %v877_v7 = vmul.f32 %v2184_v59, %v2474_v21 }
0x1508   :  { %v1748_v3 = vadd.f32 -1.0, %v875_v2 }
0x150a   :  { %879 = vrot.lane.b32.xlu0 %v1748_v3, %s2295_s0 }
0x157c   :  { %v880_v4 = vpop.permute.xlu0 %879 }
0x157d   :  { %v882_v5 = vmul.f32 %v2184_v59, %v880_v4 }
0x157f   :  { %884 = vrot.lane.b32.xlu1 %v882_v5, %s2296_s20  ;;  %v142_v5 = vadd.f32 %v2348_v48, %v2437_v38 }
0x15f1   :  { %v885_v9 = vpop.permute.xlu1 %884 }
0x15f2   :  { %v2514_v10 = vadd.f32 %v885_v9, %v877_v7 }
0x15f4   :  { %2185 = vtanh.f32 %v2514_v10 }
0x15fe   :  { %v2186_v12 = vpop.eup %2185 }
0x15ff   :  { %890 = vrot.lane.b32.xlu0 %v2186_v12, %s2295_s0 }
0x1671   :  { %v891_v13 = vpop.permute.xlu0 %890 }
0x1672   :  { %v893_v14 = vmul.f32 %v2184_v59, %v891_v13 }
0x1674   :  { %v894_v16 = vpack.c.bf16 %v893_v14, %v893_v14 }
0x1676   :  { %896 = vrot.lane.b32.xlu1 %v894_v16, %s2296_s20 }
0x16e8   :  { %v897_v18 = vpop.permute.xlu1 %896 }
0x16e9   :  { %1991 = vmatmul.mubr.msk.bf16.vlgmr.msra.gmra.mrb[16].mxu0 %vm153_vm1, %v897_v18 }
0x16ea   :  { %1995 = vmatpush3.bf16.msra.mxu0 %v2330_v26  ;;  %1998 = vmatprep.mubr.msk.bf16.mxu0 %vm2293_vm0, %v2292_v0 }
0x16eb   :  { %1996 = vmatprep.subr.bf16.mxu0 %v2292_v0 }
0x16ee   :  { %1997 = vmatpush3.bf16.msra.mxu0 %v2334_v33 }
0x16ef   :  { %2002 = vmatprep.subr.bf16.mxu0 %v2292_v0 }
0x16f1   :  { %1999 = vmatmul.mubr.msk.bf16.vlgmr.msra.gmra.mrb[20].mxu0 %vm153_vm1, %v824_v57 }
0x16f2   :  { %2003 = vmatpush3.bf16.msra.mxu0 %v2362_v6  ;;  %2006 = vmatprep.mubr.msk.bf16.mxu0 %vm2293_vm0, %v2292_v0 }
0x16f3   :  { %2004 = vmatprep.subr.bf16.mxu0 %v2292_v0 }
0x16f6   :  { %2005 = vmatpush3.bf16.msra.mxu0 %v2365_v8 }
0x16f7   :  { %2034 = vmatprep.subr.bf16.mxu0 %v2292_v0 }
0x17c4   :  { %v975_v20 = vpop.f32.mrb[20].mxu0 }
0x17c5   :  { %v981_v21 = vadd.f32 %v975_v20, %v139_v19  ;;  %v2000_v23 = vpop.f32.mrb[21].mxu0 }
0x17c6   :  { %v978_v24 = vpop.f32.mrb[22].mxu0 }
0x17c7   :  { %v1751_v25 = vmul.f32 -1.442695, %v981_v21  ;;  %v2001_v27 = vpop.f32.mrb[23].mxu0 }
0x17c9   :  { %2187 = vpow2.f32 %v1751_v25 }
0x17d3   :  { %v2188_v28 = vpop.eup %2187 }
0x17d4   :  { %v985_v22 = vadd.f32 1.0, %v2188_v28 }
0x17d6   :  { %2189 = vrcp.f32 %v985_v22 }
0x17e0   :  { %v2190_v29 = vpop.eup %2189 }
0x17e1   :  { %v988_v30 = vmul.f32 2.0, %v2190_v29  ;;  %v990_v36 = vmul.f32 %v2190_v29, %v2498_v50 }
0x17e3   :  { %v1752_v31 = vadd.f32 -1.0, %v988_v30 }
0x17e5   :  { %992 = vrot.lane.b32.xlu0 %v1752_v31, %s2295_s0 }
0x1857   :  { %v993_v32 = vpop.permute.xlu0 %992 }
0x1858   :  { %v995_v34 = vmul.f32 %v2190_v29, %v993_v32 }
0x185a   :  { %997 = vrot.lane.b32.xlu1 %v995_v34, %s2296_s20 }
0x18cc   :  { %v998_v39 = vpop.permute.xlu1 %997 }
0x18cd   :  { %v2538_v40 = vadd.f32 %v998_v39, %v990_v36 }
0x18cf   :  { %2191 = vtanh.f32 %v2538_v40 }
0x18d9   :  { %v2192_v41 = vpop.eup %2191 }
0x18da   :  { %1003 = vrot.lane.b32.xlu0 %v2192_v41, %s2295_s0 }
0x194c   :  { %v1004_v42 = vpop.permute.xlu0 %1003 }
0x194d   :  { %v1006_v43 = vmul.f32 %v2190_v29, %v1004_v42 }
0x194f   :  { %v1007_v44 = vpack.c.bf16 %v1006_v43, %v1006_v43 }
0x1951   :  { %1009 = vrot.lane.b32.xlu1 %v1007_v44, %s2296_s20 }
0x19c3   :  { %v1010_v45 = vpop.permute.xlu1 %1009 }
0x19c4   :  { %2007 = vmatmul.mubr.msk.bf16.vlgmr.msra.gmra.mrb[16].mxu0 %vm153_vm1, %v1010_v45 }
0x19c5   :  { %2035 = vmatpush3.bf16.msra.mxu0 %v2323_v11  ;;  %2038 = vmatprep.mubr.msk.bf16.mxu0 %vm2293_vm0, %v2292_v0 }
0x19c6   :  { %2036 = vmatprep.subr.bf16.mxu0 %v2292_v0 }
0x19c9   :  { %2037 = vmatpush3.bf16.msra.mxu0 %v2326_v17 }
0x19ca   :  { %2042 = vmatprep.subr.bf16.mxu0 %v2292_v0 }
0x1a97   :  { %v1048_v46 = vpop.f32.mrb[16].mxu0 }
0x1a98   :  { %v2094_v52 = vadd.f32 %v2379_v15, %v1048_v46  ;;  %v2008_v47 = vpop.f32.mrb[17].mxu0 }
0x1a99   :  { %v1051_v50 = vpop.f32.mrb[18].mxu0 }
0x1a9a   :  { %v1754_v51 = vmul.f32 -1.442695, %v2094_v52  ;;  %v2009_v54 = vpop.f32.mrb[19].mxu0 }
0x1a9c   :  { %2193 = vpow2.f32 %v1754_v51 }
0x1aa6   :  { %v2194_v55 = vpop.eup %2193 }
0x1aa7   :  { %v1058_v56 = vadd.f32 1.0, %v2194_v55 }
0x1aa9   :  { %2195 = vrcp.f32 %v1058_v56 }
0x1ab3   :  { %v2196_v57 = vpop.eup %2195 }
0x1ab4   :  { %v1061_v49 = vmul.f32 2.0, %v2196_v57  ;;  %v1063_v61 = vmul.f32 %v2196_v57, %v2514_v10 }
0x1ab6   :  { %v1755_v53 = vadd.f32 -1.0, %v1061_v49  ;;  %v147_v49 = vadd.f32 %v2431_v35, %v2348_v48 }
0x1ab8   :  { %1065 = vrot.lane.b32.xlu0 %v1755_v53, %s2295_s0 }
0x1b2a   :  { %v1066_v58 = vpop.permute.xlu0 %1065 }
0x1b2b   :  { %v1068_v60 = vmul.f32 %v2196_v57, %v1066_v58 }
0x1b2d   :  { %1070 = vrot.lane.b32.xlu1 %v1068_v60, %s2296_s20 }
0x1b9f   :  { %v1071_v62 = vpop.permute.xlu1 %1070 }
0x1ba0   :  { %v2554_v63 = vadd.f32 %v1071_v62, %v1063_v61 }
0x1ba2   :  { %2197 = vtanh.f32 %v2554_v63 }
0x1bac   :  { %v2198_v1 = vpop.eup %2197 }
0x1bad   :  { %1076 = vrot.lane.b32.xlu0 %v2198_v1, %s2295_s0 }
0x1c1f   :  { %v1077_v59 = vpop.permute.xlu0 %1076 }
0x1c20   :  { %v1079_v2 = vmul.f32 %v2196_v57, %v1077_v59 }
0x1c22   :  { %v1080_v3 = vpack.c.bf16 %v1079_v2, %v1079_v2 }
0x1c24   :  { %1082 = vrot.lane.b32.xlu1 %v1080_v3, %s2296_s20 }
0x1c96   :  { %v1083_v4 = vpop.permute.xlu1 %1082 }
0x1c97   :  { %2015 = vmatmul.mubr.msk.bf16.vlgmr.msra.gmra.mrb[24].mxu1 %vm153_vm1, %v1083_v4 }
0x1c98   :  { %2019 = vmatpush3.bf16.msra.mxu1 %v2330_v26  ;;  %2022 = vmatprep.mubr.msk.bf16.mxu1 %vm2293_vm0, %v2292_v0 }
0x1c99   :  { %2020 = vmatprep.subr.bf16.mxu1 %v2292_v0 }
0x1c9c   :  { %2021 = vmatpush3.bf16.msra.mxu1 %v2334_v33 }
0x1c9d   :  { %2026 = vmatprep.subr.bf16.mxu1 %v2292_v0 }
0x1c9f   :  { %2023 = vmatmul.mubr.msk.bf16.vlgmr.msra.gmra.mrb[28].mxu1 %vm153_vm1, %v1010_v45 }
0x1ca0   :  { %2027 = vmatpush3.bf16.msra.mxu1 %v2362_v6  ;;  %2030 = vmatprep.mubr.msk.bf16.mxu1 %vm2293_vm0, %v2292_v0 }
0x1ca1   :  { %2028 = vmatprep.subr.bf16.mxu1 %v2292_v0 }
0x1ca4   :  { %2029 = vmatpush3.bf16.msra.mxu1 %v2365_v8 }
0x1ca5   :  { %2058 = vmatprep.subr.bf16.mxu1 %v2292_v0 }
0x1d72   :  { %v1161_v7 = vpop.f32.mrb[28].mxu1 }
0x1d73   :  { %v1167_v9 = vadd.f32 %v1161_v7, %v142_v5  ;;  %v2024_v10 = vpop.f32.mrb[29].mxu1 }
0x1d74   :  { %v1164_v12 = vpop.f32.mrb[30].mxu1 }
0x1d75   :  { %v1758_v13 = vmul.f32 -1.442695, %v1167_v9  ;;  %v2025_v14 = vpop.f32.mrb[31].mxu1 }
0x1d77   :  { %2199 = vpow2.f32 %v1758_v13 }
0x1d81   :  { %v2200_v16 = vpop.eup %2199 }
0x1d82   :  { %v1171_v18 = vadd.f32 1.0, %v2200_v16 }
0x1d84   :  { %2201 = vrcp.f32 %v1171_v18 }
0x1d8e   :  { %v2202_v19 = vpop.eup %2201 }
0x1d8f   :  { %v1174_v20 = vmul.f32 2.0, %v2202_v19  ;;  %v1176_v38 = vmul.f32 %v2202_v19, %v2538_v40 }
0x1d91   :  { %v1759_v21 = vadd.f32 -1.0, %v1174_v20 }
0x1d93   :  { %1178 = vrot.lane.b32.xlu0 %v1759_v21, %s2295_s0 }
0x1e05   :  { %v1179_v23 = vpop.permute.xlu0 %1178 }
0x1e06   :  { %v1181_v24 = vmul.f32 %v2202_v19, %v1179_v23 }
0x1e08   :  { %1183 = vrot.lane.b32.xlu1 %v1181_v24, %s2296_s20 }
0x1e7a   :  { %v1184_v25 = vpop.permute.xlu1 %1183 }
0x1e7b   :  { %v2578_v27 = vadd.f32 %v1184_v25, %v1176_v38 }
0x1e7d   :  { %2203 = vtanh.f32 %v2578_v27 }
0x1e87   :  { %v2204_v28 = vpop.eup %2203 }
0x1e88   :  { %1189 = vrot.lane.b32.xlu0 %v2204_v28, %s2295_s0 }
0x1efa   :  { %v1190_v22 = vpop.permute.xlu0 %1189 }
0x1efb   :  { %v1192_v29 = vmul.f32 %v2202_v19, %v1190_v22 }
0x1efd   :  { %v1193_v30 = vpack.c.bf16 %v1192_v29, %v1192_v29 }
0x1eff   :  { %1195 = vrot.lane.b32.xlu1 %v1193_v30, %s2296_s20 }
0x1f71   :  { %v1196_v31 = vpop.permute.xlu1 %1195 }
0x1f72   :  { %2031 = vmatmul.mubr.msk.bf16.vlgmr.msra.gmra.mrb[24].mxu1 %vm153_vm1, %v1196_v31 }
0x1f73   :  { %2059 = vmatpush3.bf16.msra.mxu1 %v2323_v11  ;;  %2062 = vmatprep.mubr.msk.bf16.mxu1 %vm2293_vm0, %v2292_v0 }
0x1f74   :  { %2060 = vmatprep.subr.bf16.mxu1 %v2292_v0 }
0x1f77   :  { %2061 = vmatpush3.bf16.msra.mxu1 %v2326_v17 }
0x1f78   :  { %2066 = vmatprep.subr.bf16.mxu1 %v2292_v0 }
0x2045   :  { %v1234_v32 = vpop.f32.mrb[24].mxu1 }
0x2046   :  { %v2095_v34 = vadd.f32 %v2379_v15, %v1234_v32  ;;  %v2032_v36 = vpop.f32.mrb[25].mxu1 }
0x2047   :  { %v1237_v39 = vpop.f32.mrb[26].mxu1 }
0x2048   :  { %v1761_v40 = vmul.f32 -1.442695, %v2095_v34  ;;  %v2033_v41 = vpop.f32.mrb[27].mxu1 }
0x204a   :  { %2205 = vpow2.f32 %v1761_v40 }
0x2054   :  { %v2206_v42 = vpop.eup %2205 }
0x2055   :  { %v1244_v43 = vadd.f32 1.0, %v2206_v42 }
0x2057   :  { %2207 = vrcp.f32 %v1244_v43 }
0x2061   :  { %v2208_v11 = vpop.eup %2207 }
0x2062   :  { %v1247_v44 = vmul.f32 2.0, %v2208_v11  ;;  %v1249_v52 = vmul.f32 %v2208_v11, %v2554_v63 }
0x2064   :  { %v1762_v45 = vadd.f32 -1.0, %v1247_v44 }
0x2066   :  { %1251 = vrot.lane.b32.xlu0 %v1762_v45, %s2295_s0 }
0x20d8   :  { %v1252_v46 = vpop.permute.xlu0 %1251 }
0x20d9   :  { %v1254_v17 = vmul.f32 %v2208_v11, %v1252_v46 }
0x20db   :  { %1256 = vrot.lane.b32.xlu1 %v1254_v17, %s2296_s20 }
0x214d   :  { %v1257_v47 = vpop.permute.xlu1 %1256 }
0x214e   :  { %v2594_v50 = vadd.f32 %v1257_v47, %v1249_v52 }
0x2150   :  { %2209 = vtanh.f32 %v2594_v50 }
0x215a   :  { %v2210_v51 = vpop.eup %2209 }
0x215b   :  { %1262 = vrot.lane.b32.xlu0 %v2210_v51, %s2295_s0 }
0x21cd   :  { %v1263_v54 = vpop.permute.xlu0 %1262 }
0x21ce   :  { %v1265_v55 = vmul.f32 %v2208_v11, %v1263_v54 }
0x21d0   :  { %v1266_v56 = vpack.c.bf16 %v1265_v55, %v1265_v55 }
0x21d2   :  { %1268 = vrot.lane.b32.xlu1 %v1266_v56, %s2296_s20 }
0x2244   :  { %v1269_v57 = vpop.permute.xlu1 %1268 }
0x2245   :  { %2039 = vmatmul.mubr.msk.bf16.vlgmr.msra.gmra.mrb[24].mxu0 %vm153_vm1, %v1269_v57 }
0x2246   :  { %2043 = vmatpush3.bf16.msra.mxu0 %v2330_v26  ;;  %2046 = vmatprep.mubr.msk.bf16.mxu0 %vm2293_vm0, %v2292_v0 }
0x2247   :  { %2044 = vmatprep.subr.bf16.mxu0 %v2292_v0 }
0x224a   :  { %2045 = vmatpush3.bf16.msra.mxu0 %v2334_v33 }
0x224b   :  { %2050 = vmatprep.subr.bf16.mxu0 %v2292_v0 }
0x224d   :  { %2047 = vmatmul.mubr.msk.bf16.vlgmr.msra.gmra.mrb[28].mxu0 %vm153_vm1, %v1196_v31 }
0x224e   :  { %2051 = vmatpush3.bf16.msra.mxu0 %v2362_v6  ;;  %2054 = vmatprep.mubr.msk.bf16.mxu0 %vm2293_vm0, %v2292_v0 }
0x224f   :  { %2052 = vmatprep.subr.bf16.mxu0 %v2292_v0 }
0x2252   :  { %2053 = vmatpush3.bf16.msra.mxu0 %v2365_v8 }
0x2253   :  { %2082 = vmatprep.subr.bf16.mxu0 %v2292_v0 }
0x2320   :  { %v1347_v53 = vpop.f32.mrb[28].mxu0 }
0x2321   :  { %v1353_v58 = vadd.f32 %v1347_v53, %v147_v49  ;;  %v2048_v60 = vpop.f32.mrb[29].mxu0 }
0x2322   :  { %v1350_v61 = vpop.f32.mrb[30].mxu0 }
0x2323   :  { %v1765_v62 = vmul.f32 -1.442695, %v1353_v58  ;;  %v2049_v63 = vpop.f32.mrb[31].mxu0  ;;  %v2240_v61 = vld [vmem:[#allocation2 + $0xe8] ss:$0 sm:$0xff] }
0x2325   :  { %2211 = vpow2.f32 %v1765_v62 }
0x232f   :  { %v2212_v1 = vpop.eup %2211 }
0x2330   :  { %v1357_v59 = vadd.f32 1.0, %v2212_v1 }
0x2332   :  { %2213 = vrcp.f32 %v1357_v59 }
0x233c   :  { %v2214_v2 = vpop.eup %2213 }
0x233d   :  { %v1360_v3 = vmul.f32 2.0, %v2214_v2  ;;  %v1362_v48 = vmul.f32 %v2214_v2, %v2578_v27 }
0x233f   :  { %v1766_v4 = vadd.f32 -1.0, %v1360_v3 }
0x2341   :  { %1364 = vrot.lane.b32.xlu0 %v1766_v4, %s2295_s0 }
0x23b3   :  { %v1365_v5 = vpop.permute.xlu0 %1364 }
0x23b4   :  { %v1367_v7 = vmul.f32 %v2214_v2, %v1365_v5 }
0x23b6   :  { %1369 = vrot.lane.b32.xlu1 %v1367_v7, %s2296_s20 }
0x2428   :  { %v1370_v35 = vpop.permute.xlu1 %1369 }
0x2429   :  { %v2618_v9 = vadd.f32 %v1370_v35, %v1362_v48 }
0x242b   :  { %2215 = vtanh.f32 %v2618_v9 }
0x2435   :  { %v2216_v10 = vpop.eup %2215 }
0x2436   :  { %1375 = vrot.lane.b32.xlu0 %v2216_v10, %s2295_s0 }
0x24a8   :  { %v1376_v12 = vpop.permute.xlu0 %1375 }
0x24a9   :  { %v1378_v13 = vmul.f32 %v2214_v2, %v1376_v12 }
0x24ab   :  { %v1379_v14 = vpack.c.bf16 %v1378_v13, %v1378_v13 }
0x24ad   :  { %1381 = vrot.lane.b32.xlu1 %v1379_v14, %s2296_s20  ;;  %v1639_v14 = vld [vmem:[#allocation2 + $0xf0] sm:$0xff] }
0x251f   :  { %v1382_v16 = vpop.permute.xlu1 %1381 }
0x2520   :  { %2055 = vmatmul.mubr.msk.bf16.vlgmr.msra.gmra.mrb[24].mxu0 %vm153_vm1, %v1382_v16 }
0x2521   :  { %2086 = vmatprep.mubr.msk.bf16.mxu0 %vm2293_vm0, %v2292_v0 }
0x25f3   :  { %v1420_v18 = vpop.f32.mrb[24].mxu0 }
0x25f4   :  { %v2096_v19 = vadd.f32 %v2379_v15, %v1420_v18  ;;  %v2056_v20 = vpop.f32.mrb[25].mxu0  ;;  %v1641_v18 = vld [vmem:[#allocation2 + $0x100] sm:$0xff] }
0x25f5   :  { %v1423_v21 = vpop.f32.mrb[26].mxu0  ;;  %v1642_v20 = vld [vmem:[#allocation2 + $0x108] sm:$0xff] }
0x25f6   :  { %v1768_v23 = vmul.f32 -1.442695, %v2096_v19  ;;  %v2057_v24 = vpop.f32.mrb[27].mxu0  ;;  %v1644_v21 = vpack.c.bf16 %v1642_v20, %v1641_v18 }
0x25f8   :  { %2217 = vpow2.f32 %v1768_v23 }
0x2602   :  { %v2218_v38 = vpop.eup %2217 }
0x2603   :  { %v1430_v25 = vadd.f32 1.0, %v2218_v38 }
0x2605   :  { %2219 = vrcp.f32 %v1430_v25 }
0x260f   :  { %v2220_v27 = vpop.eup %2219 }
0x2610   :  { %v1433_v28 = vmul.f32 2.0, %v2220_v27  ;;  %v1435_v31 = vmul.f32 %v2220_v27, %v2594_v50 }
0x2612   :  { %v1769_v22 = vadd.f32 -1.0, %v1433_v28  ;;  %v1777_v28 = vld [vmem:[#allocation2 + $0x110] ss:$0 sm:$0xff] }
0x2614   :  { %1437 = vrot.lane.b32.xlu0 %v1769_v22, %s2295_s0 }
0x2686   :  { %v1438_v29 = vpop.permute.xlu0 %1437 }
0x2687   :  { %v1440_v30 = vmul.f32 %v2220_v27, %v1438_v29 }
0x2689   :  { %1442 = vrot.lane.b32.xlu1 %v1440_v30, %s2296_s20 }
0x26fb   :  { %v1443_v15 = vpop.permute.xlu1 %1442 }
0x26fc   :  { %v2630_v32 = vadd.f32 %v1443_v15, %v1435_v31 }
0x26fe   :  { %2221 = vtanh.f32 %v2630_v32 }
0x2708   :  { %v2222_v34 = vpop.eup %2221 }
0x2709   :  { %1448 = vrot.lane.b32.xlu0 %v2222_v34, %s2295_s0 }
0x277b   :  { %v1449_v36 = vpop.permute.xlu0 %1448 }
0x277c   :  { %v1451_v39 = vmul.f32 %v2220_v27, %v1449_v36 }
0x277e   :  { %v1452_v40 = vpack.c.bf16 %v1451_v39, %v1451_v39 }
0x2780   :  { %1454 = vrot.lane.b32.xlu1 %v1452_v40, %s2296_s20 }
0x27f2   :  { %v1455_v41 = vpop.permute.xlu1 %1454 }
0x27f3   :  { %2063 = vmatmul.mubr.msk.bf16.vlgmr.msra.gmra.mrb[32].mxu1 %vm153_vm1, %v1455_v41 }
0x27f4   :  { %2067 = vmatpush3.bf16.msra.mxu1 %v2330_v26  ;;  %2070 = vmatprep.mubr.msk.bf16.mxu1 %vm2293_vm0, %v2292_v0  ;;  %v2239_v26 = vld [vmem:[#allocation2 + $0xe0] ss:$0 sm:$0xff] }
0x27f5   :  { %2068 = vmatprep.subr.bf16.mxu1 %v2292_v0  ;;  %v150_v42 = vadd.f32 %v2239_v26, %v2435_v37 }
0x27f8   :  { %2069 = vmatpush3.bf16.msra.mxu1 %v2334_v33 }
0x27f9   :  { %2074 = vmatprep.subr.bf16.mxu1 %v2292_v0 }
0x27fb   :  { %2071 = vmatmul.mubr.msk.bf16.vlgmr.msra.gmra.mrb[36].mxu1 %vm153_vm1, %v1382_v16  ;;  %v1640_v16 = vld [vmem:[#allocation2 + $0xf8] sm:$0xff] }
0x27fc   :  { %2075 = vmatpush3.bf16.msra.mxu1 %v2362_v6  ;;  %2078 = vmatprep.mubr.msk.bf16.mxu1 %vm2293_vm0, %v2292_v0  ;;  %v1643_v19 = vpack.c.bf16 %v1640_v16, %v1639_v14 }
0x27fd   :  { %2076 = vmatprep.subr.bf16.mxu1 %v2292_v0 }
0x27fe   :  { %2083 = vmatpush3.bf16.msra.mxu0 %v1643_v19 }
0x27ff   :  { %2084 = vmatprep.subr.bf16.mxu0 %v2292_v0 }
0x2800   :  { %2077 = vmatpush3.bf16.msra.mxu1 %v2365_v8 }
0x2802   :  { %2085 = vmatpush3.bf16.msra.mxu0 %v1644_v21 }
0x28ce   :  { %v1533_v43 = vpop.f32.mrb[36].mxu1 }
0x28cf   :  { %v1539_v11 = vadd.f32 %v1533_v43, %v150_v42  ;;  %v2072_v44 = vpop.f32.mrb[37].mxu1 }
0x28d0   :  { %v1536_v33 = vpop.f32.mrb[38].mxu1 }
0x28d1   :  { %v1772_v45 = vmul.f32 -1.442695, %v1539_v11  ;;  %v2073_v46 = vpop.f32.mrb[39].mxu1 }
0x28d3   :  { %2223 = vpow2.f32 %v1772_v45 }
0x28dd   :  { %v2224_v17 = vpop.eup %2223 }
0x28de   :  { %v1543_v52 = vadd.f32 1.0, %v2224_v17 }
0x28e0   :  { %2225 = vrcp.f32 %v1543_v52 }
0x28ea   :  { %v2226_v6 = vpop.eup %2225 }
0x28eb   :  { %v1546_v47 = vmul.f32 2.0, %v2226_v6  ;;  %v1548_v37 = vmul.f32 %v2226_v6, %v2618_v9 }
0x28ed   :  { %v1773_v50 = vadd.f32 -1.0, %v1546_v47 }
0x28ef   :  { %1550 = vrot.lane.b32.xlu0 %v1773_v50, %s2295_s0 }
0x2961   :  { %v1551_v51 = vpop.permute.xlu0 %1550 }
0x2962   :  { %v1553_v8 = vmul.f32 %v2226_v6, %v1551_v51 }
0x2964   :  { %1555 = vrot.lane.b32.xlu1 %v1553_v8, %s2296_s20 }
0x29d6   :  { %v1556_v54 = vpop.permute.xlu1 %1555 }
0x29d7   :  { %v1558_v55 = vadd.f32 %v1556_v54, %v1548_v37 }
0x29d9   :  { %2227 = vtanh.f32 %v1558_v55 }
0x29e3   :  { %v2228_v56 = vpop.eup %2227 }
0x29e4   :  { %1561 = vrot.lane.b32.xlu0 %v2228_v56, %s2295_s0 }
0x2a56   :  { %v1562_v57 = vpop.permute.xlu0 %1561 }
0x2a57   :  { %v1564_v49 = vmul.f32 %v2226_v6, %v1562_v57 }
0x2a59   :  { %v1565_v53 = vpack.c.bf16 %v1564_v49, %v1564_v49 }
0x2a5b   :  { %1567 = vrot.lane.b32.xlu1 %v1565_v53, %s2296_s20 }
0x2acd   :  { %v1568_v58 = vpop.permute.xlu1 %1567 }
0x2ace   :  { %2079 = vmatmul.mubr.msk.bf16.vlgmr.msra.gmra.mrb[32].mxu1 %vm153_vm1, %v1568_v58 }
0x2ba1   :  { %v1606_v60 = vpop.f32.mrb[32].mxu1 }
0x2ba2   :  { %v2097_v62 = vadd.f32 %v2240_v61, %v1606_v60  ;;  %v2080_v63 = vpop.f32.mrb[33].mxu1 }
0x2ba3   :  { %v1609_v1 = vpop.f32.mrb[34].mxu1 }
0x2ba4   :  { %v1775_v59 = vmul.f32 -1.442695, %v2097_v62  ;;  %v2081_v2 = vpop.f32.mrb[35].mxu1 }
0x2ba6   :  { %2229 = vpow2.f32 %v1775_v59 }
0x2bb0   :  { %v2230_v3 = vpop.eup %2229 }
0x2bb1   :  { %v1616_v4 = vadd.f32 1.0, %v2230_v3 }
0x2bb3   :  { %2231 = vrcp.f32 %v1616_v4 }
0x2bbd   :  { %v2232_v5 = vpop.eup %2231 }
0x2bbe   :  { %v1619_v7 = vmul.f32 2.0, %v2232_v5  ;;  %v1621_v10 = vmul.f32 %v2232_v5, %v2630_v32 }
0x2bc0   :  { %v1776_v48 = vadd.f32 -1.0, %v1619_v7 }
0x2bc2   :  { %1623 = vrot.lane.b32.xlu0 %v1776_v48, %s2295_s0 }
0x2c34   :  { %v1624_v35 = vpop.permute.xlu0 %1623 }
0x2c35   :  { %v1626_v9 = vmul.f32 %v2232_v5, %v1624_v35 }
0x2c37   :  { %1628 = vrot.lane.b32.xlu1 %v1626_v9, %s2296_s20 }
0x2ca9   :  { %v1629_v12 = vpop.permute.xlu1 %1628 }
0x2caa   :  { %v1631_v13 = vadd.f32 %v1629_v12, %v1621_v10 }
0x2cac   :  { %2233 = vtanh.f32 %v1631_v13 }
0x2cb6   :  { %v2234_v23 = vpop.eup %2233 }
0x2cb7   :  { %1634 = vrot.lane.b32.xlu0 %v2234_v23, %s2295_s0 }
0x2d29   :  { %v1635_v24 = vpop.permute.xlu0 %1634 }
0x2d2a   :  { %v1637_v38 = vmul.f32 %v2232_v5, %v1635_v24 }
0x2d2c   :  { %v1638_v25 = vpack.c.bf16 %v1637_v38, %v1637_v38 }
0x2d2e   :  { %1651 = vrot.lane.b32.xlu1 %v1638_v25, %s2296_s20 }
0x2da0   :  { %v1652_v27 = vpop.permute.xlu1 %1651 }
0x2da1   :  { %2087 = vmatmul.mubr.msk.bf16.vlgmr.msra.gmra.mrb[32].mxu0 %vm153_vm1, %v1652_v27 }
0x2e74   :  { %v1690_v22 = vpop.f32.mrb[32].mxu0 }
0x2e75   :  { %v1691_v29 = vadd.f32 %v1777_v28, %v1690_v22  ;;  %v2088_v30 = vpop.f32.mrb[33].mxu0 }
0x2e76   :  { %v1693_v31 = vpop.f32.mrb[34].mxu0 }
0x2e77   :  { %1696 = vmax.xlane.f32.xlu0 %v1691_v29  ;;  %v2089_v15 = vpop.f32.mrb[35].mxu0 }
0x2f04   :  { %v1697_v0 = vpop.xlane.xlu0 %1696 }
0x2f05   :  { %v1698_v32 = vsub.f32 %v1691_v29, %v1697_v0 }
0x2f07   :  { %v1699_v34 = vmul.f32 1.442695, %v1698_v32 }
0x2f09   :  { %2235 = vpow2.f32 %v1699_v34 }
0x2f13   :  { %v2236_v36 = vpop.eup %2235 }
0x2f14   :  { %1701 = vadd.xlane.f32.xlu1 %v2236_v36 }
0x2fa1   :  { %v1702_v39 = vpop.xlane.xlu1 %1701 }
0x2fa2   :  { %2237 = vrcp.f32 %v1702_v39 }
0x2fac   :  { %v2238_v40 = vpop.eup %2237 }
0x2fad   :  { %v1704_v41 = vmul.f32 %v2238_v40, %v2236_v36 }
0x2faf   :  { %1705 = vst [vmem:[#allocation5] sm:$0xff] %v1704_v41 }
0x2fb0   :  { %2274 = shalt.err (!%p2271_p12)
}
0x2fb1   :  { %s2275_s26 = scalar_lea.hbm %s2675_s1, 128 }
0x2fb2   :  { %p2276_p13 = scmp.ne.s32.totalorder %s2675_s1, %s2275_s26  ;;  %p2279_p0 = scmp.lt.u32.totalorder %s2275_s26, %s2675_s1 }
0x2fb4   :  { %p2281_p1 = pnand %p2279_p0, %p2276_p13 }
0x2fb6   :  { %2284 = shalt.err (!%p2281_p1)
}
0x2fb7   :  { %1715 = dma.vmem_to_hbm [thread:$0]  %s1713_s22, 128, %s2675_s1, [#allocation4]  }
0x2fb8   :  { %2287 = dma.done.wait [#allocation4], 128  }
0x2fb9   :  { %2288 = vsyncadd [#allocation4], 4294967168 }
0x2fba   :  { %1719 = vsyncpa [#allocation3], 1 }
0x2fbb   :  { %1720 = vsyncpa [#allocation4], 1 }

</bundles_post_ra>
